<compile_context>
chip_gen: v6e
topology: v6e:2x2x1
jax: 0.10.0
libtpu: 0.0.40
codegen_flags: <defaults>
</compile_context>

<pallas_src>
import jax
import jax.numpy as jnp
from jax import lax
from jax.experimental import pallas as pl
from jax.experimental.pallas import tpu as pltpu

MXU_DTYPE = jnp.bfloat16            # conv matmul operand dtype (accumulation stays f32)
VMEM_LIMIT = 32 * 1024 * 1024       # explicit scoped-VMEM budget for every pallas_call
BN_EPS = 1e-5
LRELU_SLOPE = 0.2


# --------------------------------------------------------------------------------------
# Generic fused conv kernel: per-channel scale/shift (deferred BatchNorm) + activation
# + zero-pad + 3x3 stride-1 conv (per-dy im2col, bf16 MXU matmul) [+ bias] [+ tanh]
# [+ per-channel sum / sumsq stats for the following BatchNorm].
# --------------------------------------------------------------------------------------
def _make_conv_kernel(n_in, H, W, ceff, in_act, has_bias, out_tanh, want_stats):
    HW = H * W

    def kernel(*refs):
        i = 0
        x_refs = refs[i:i + n_in]; i += n_in
        sc_refs = refs[i:i + n_in]; i += n_in
        sh_refs = refs[i:i + n_in]; i += n_in
        w_refs = refs[i:i + n_in]; i += n_in
        b_ref = None
        if has_bias:
            b_ref = refs[i]; i += 1
        out_ref = refs[i]; i += 1
        stats_ref = refs[i] if want_stats else None

        acc = jnp.zeros((HW, ceff), jnp.float32)
        for t in range(n_in):
            x = x_refs[t][0].astype(jnp.float32)                  # (H, W, C)
            C = x.shape[-1]
            sc = sc_refs[t][...].reshape(1, 1, C)
            sh = sh_refs[t][...].reshape(1, 1, C)
            x = x * sc + sh                                       # deferred BatchNorm
            if in_act == "lrelu":
                x = jnp.where(x > 0, x, LRELU_SLOPE * x)
            elif in_act == "relu":
                x = jnp.maximum(x, 0.0)
            # zero-pad by 1 (applied AFTER norm/activation, like nn.Conv2d padding).
            zr = jnp.zeros((1, W, C), jnp.float32)
            zc = jnp.zeros((H + 2, 1, C), jnp.float32)
            xp = jnp.concatenate([zr, x, zr], axis=0)
            xp = jnp.concatenate([zc, xp, zc], axis=1)            # (H+2, W+2, C)
            for dy in range(3):
                rows = xp[dy:dy + H]                              # (H, W+2, C)
                patch = jnp.concatenate(
                    [rows[:, 0:W], rows[:, 1:W + 1], rows[:, 2:W + 2]], axis=2)
                acc = acc + jnp.dot(
                    patch.reshape(HW, 3 * C).astype(MXU_DTYPE),
                    w_refs[t][dy],                                # (3C, Ceff) bf16
                    preferred_element_type=jnp.float32)

        if has_bias:
            acc = acc + b_ref[...].astype(jnp.float32)
        if want_stats:
            s1 = jnp.sum(acc, axis=0, keepdims=True)
            s2 = jnp.sum(acc * acc, axis=0, keepdims=True)
            stats_ref[0] = jnp.concatenate([s1, s2], axis=0)      # (2, Ceff)
        if out_tanh:
            acc = jnp.tanh(acc)
        out_ref[0] = acc.reshape(H, W, ceff).astype(out_ref.dtype)

    return kernel


def _conv_call(xs, scales, shifts, w_preps, *, in_act, bias=None,
               out_tanh=False, want_stats=False):
    n_in = len(xs)
    N, H, W, _ = xs[0].shape
    ceff = int(w_preps[0].shape[-1])
    kern = _make_conv_kernel(n_in, H, W, ceff, in_act, bias is not None,
                             out_tanh, want_stats)

    operands, in_specs = [], []
    for x in xs:
        operands.append(x)
        in_specs.append(pl.BlockSpec((1, H, W, int(x.shape[-1])),
                                     lambda n: (n, 0, 0, 0)))
    for s in scales:
        operands.append(s)
        in_specs.append(pl.BlockSpec((1, int(s.shape[-1])), lambda n: (0, 0)))
    for s in shifts:
        operands.append(s)
        in_specs.append(pl.BlockSpec((1, int(s.shape[-1])), lambda n: (0, 0)))
    for w in w_preps:
        operands.append(w)
        in_specs.append(pl.BlockSpec(tuple(int(d) for d in w.shape),
                                     lambda n: (0, 0, 0)))
    if bias is not None:
        operands.append(bias)
        in_specs.append(pl.BlockSpec((1, ceff), lambda n: (0, 0)))

    out_shape = [jax.ShapeDtypeStruct((N, H, W, ceff), jnp.float32)]
    out_specs = [pl.BlockSpec((1, H, W, ceff), lambda n: (n, 0, 0, 0))]
    if want_stats:
        out_shape.append(jax.ShapeDtypeStruct((N, 2, ceff), jnp.float32))
        out_specs.append(pl.BlockSpec((1, 2, ceff), lambda n: (n, 0, 0)))

    res = pl.pallas_call(
        kern,
        out_shape=tuple(out_shape) if want_stats else out_shape[0],
        grid=(N,),
        in_specs=in_specs,
        out_specs=tuple(out_specs) if want_stats else out_specs[0],
        compiler_params=pltpu.CompilerParams(
            dimension_semantics=("parallel",),
            vmem_limit_bytes=VMEM_LIMIT),
    )(*operands)
    if want_stats:
        return res[0], res[1]
    return res, None


# --------------------------------------------------------------------------------------
# Self_Attn kernel: fused deferred-BN + 1x1 Q/K/V + softmax(QK^T) + attn@V + gamma*res+x
# --------------------------------------------------------------------------------------
def _make_attn_kernel(H, W, C, C8):
    HW = H * W

    def kernel(x_ref, sc_ref, sh_ref, wq_ref, bq_ref, wk_ref, bk_ref,
               wv_ref, bv_ref, gamma_ref, out_ref):
        xn = x_ref[0].astype(jnp.float32).reshape(HW, C)
        xn = xn * sc_ref[...] + sh_ref[...]                         # apply pending BN
        q = jnp.dot(xn, wq_ref[...], preferred_element_type=jnp.float32) + bq_ref[...]
        k = jnp.dot(xn, wk_ref[...], preferred_element_type=jnp.float32) + bk_ref[...]
        v = jnp.dot(xn, wv_ref[...], preferred_element_type=jnp.float32) + bv_ref[...]
        e = lax.dot_general(q, k, (((1,), (1,)), ((), ())),
                            preferred_element_type=jnp.float32)      # (HW, HW)
        e = e - jnp.max(e, axis=-1, keepdims=True)
        p = jnp.exp(e)
        attn = p / jnp.sum(p, axis=-1, keepdims=True)
        out = jnp.dot(attn, v, preferred_element_type=jnp.float32)   # (HW, C)
        res = gamma_ref[0, 0] * out + xn
        out_ref[0] = res.reshape(H, W, C).astype(out_ref.dtype)

    return kernel


def _self_attn(raw, scale, shift, p):
    N, H, W, C = raw.shape
    C8 = int(p["wq"].shape[-1])
    kern = _make_attn_kernel(H, W, C, C8)
    return pl.pallas_call(
        kern,
        out_shape=jax.ShapeDtypeStruct((N, H, W, C), jnp.float32),
        grid=(N,),
        in_specs=[
            pl.BlockSpec((1, H, W, C), lambda n: (n, 0, 0, 0)),
            pl.BlockSpec((1, C), lambda n: (0, 0)),
            pl.BlockSpec((1, C), lambda n: (0, 0)),
            pl.BlockSpec((C, C8), lambda n: (0, 0)),
            pl.BlockSpec((1, C8), lambda n: (0, 0)),
            pl.BlockSpec((C, C8), lambda n: (0, 0)),
            pl.BlockSpec((1, C8), lambda n: (0, 0)),
            pl.BlockSpec((C, C), lambda n: (0, 0)),
            pl.BlockSpec((1, C), lambda n: (0, 0)),
            pl.BlockSpec((1, 1), lambda n: (0, 0)),
        ],
        out_specs=pl.BlockSpec((1, H, W, C), lambda n: (n, 0, 0, 0)),
        compiler_params=pltpu.CompilerParams(
            dimension_semantics=("parallel",),
            vmem_limit_bytes=VMEM_LIMIT),
    )(raw, scale, shift, p["wq"], p["bq"], p["wk"], p["bk"],
      p["wv"], p["bv"], p["gamma"])


# --------------------------------------------------------------------------------------
# Host-side layout / weight preparation helpers.
# --------------------------------------------------------------------------------------
def _space_to_depth(x):                      # (N,H,W,C) -> (N,H/2,W/2,4C), ch = (py*2+px)*C+ci
    N, H, W, C = x.shape
    x = x.reshape(N, H // 2, 2, W // 2, 2, C)
    x = jnp.transpose(x, (0, 1, 3, 2, 4, 5))
    return x.reshape(N, H // 2, W // 2, 4 * C)


def _depth_to_space(y, cout):                # (N,H,W,4C) -> (N,2H,2W,C), ch = (r*2+s)*C+co
    N, H, W, _ = y.shape
    y = y.reshape(N, H, W, 2, 2, cout)
    y = jnp.transpose(y, (0, 1, 3, 2, 4, 5))
    return y.reshape(N, 2 * H, 2 * W, cout)


def _prep_down_weight(Wd):
    """PyTorch Conv2d weight (Cout, Cin, 4, 4) -> (3, 3*4*Cin, Cout) for the 3x3 kernel."""
    Cout, Cin, _, _ = Wd.shape
    wk = jnp.zeros((3, 3, 4 * Cin, Cout), jnp.float32)
    for dy in range(3):
        for py in range(2):
            kh = 2 * dy + py - 1
            if not (0 <= kh < 4):
                continue
            for dx in range(3):
                for px in range(2):
                    kw = 2 * dx + px - 1
                    if not (0 <= kw < 4):
                        continue
                    off = (py * 2 + px) * Cin
                    wk = wk.at[dy, dx, off:off + Cin, :].set(Wd[:, :, kh, kw].T)
    return wk.reshape(3, 3 * 4 * Cin, Cout)


def _prep_up_weight(Wt):
    """PyTorch ConvTranspose2d weight (Cin, Cout, 4, 4) -> (3, 3*Cin, 4*Cout)."""
    Cin, Cout, _, _ = Wt.shape
    wk = jnp.zeros((3, 3, Cin, 4 * Cout), jnp.float32)
    for dy in range(3):
        for r in range(2):
            kh = r + 3 - 2 * dy
            if not (0 <= kh < 4):
                continue
            for dx in range(3):
                for s in range(2):
                    kw = s + 3 - 2 * dx
                    if not (0 <= kw < 4):
                        continue
                    off = (r * 2 + s) * Cout
                    wk = wk.at[dy, dx, :, off:off + Cout].set(Wt[:, :, kh, kw])
    return wk.reshape(3, 3 * Cin, 4 * Cout)


def _bn_scale_shift(stats, count, gamma, beta):
    s, ss = stats[0], stats[1]
    mean = s / count
    var = jnp.maximum(ss / count - mean * mean, 0.0)
    inv = gamma * lax.rsqrt(var + BN_EPS)
    return inv.reshape(1, -1), (beta - mean * inv).reshape(1, -1)


def _identity_affine(C):
    return jnp.ones((1, C), jnp.float32), jnp.zeros((1, C), jnp.float32)


# --------------------------------------------------------------------------------------
# Layer wrappers (Pallas path).
# --------------------------------------------------------------------------------------
def _down_conv(seg, w_prep, *, act, want_stats):
    raw, sc, sh = seg
    xs = _space_to_depth(raw)
    sc4 = jnp.tile(sc, (1, 4))
    sh4 = jnp.tile(sh, (1, 4))
    y, st = _conv_call([xs], [sc4], [sh4], [w_prep], in_act=act, want_stats=want_stats)
    if want_stats:
        st = jnp.sum(st, axis=0)                      # (2, Cout)
    return y, st


def _up_conv(segs, w_preps, cout, *, bias=None, out_tanh=False, want_stats):
    xs = [s[0] for s in segs]
    scs = [s[1] for s in segs]
    shs = [s[2] for s in segs]
    yk, st = _conv_call(xs, scs, shs, w_preps, in_act="relu", bias=bias,
                        out_tanh=out_tanh, want_stats=want_stats)
    y = _depth_to_space(yk, cout)
    if want_stats:
        st = jnp.sum(st, axis=0).reshape(2, 4, cout).sum(axis=1)   # (2, cout)
    return y, st


# --------------------------------------------------------------------------------------
# Parameter construction mirroring UnetGeneratorSelfAttn's constructor.
# --------------------------------------------------------------------------------------
def _uniform(key, shape, fan_in):
    b = 1.0 / (fan_in ** 0.5)
    return jax.random.uniform(key, shape, jnp.float32, -b, b)


def _attn_init(key, C):
    C8 = max(C // 8, 1)
    ks = jax.random.split(key, 6)
    return dict(
        wq=_uniform(ks[0], (C, C8), C), bq=_uniform(ks[1], (1, C8), C),
        wk=_uniform(ks[2], (C, C8), C), bk=_uniform(ks[3], (1, C8), C),
        wv=_uniform(ks[4], (C, C), C), bv=_uniform(ks[5], (1, C), C),
        # torch initializes gamma to 0 (attention disabled); use a nonzero value so the
        # attention path is numerically exercised by the check.
        gamma=jnp.full((1, 1), 0.5, jnp.float32),
    )


def init_unet(key, input_nc, output_nc, num_downs, ngf):
    keys = iter(jax.random.split(key, 128))

    def make_block(outer_nc, inner_nc, block_input_nc=None, submodule=None,
                   outermost=False, innermost=False, self_attention=False):
        if block_input_nc is None:
            block_input_nc = outer_nc
        blk = dict(outermost=outermost, innermost=innermost,
                   outer_nc=outer_nc, inner_nc=inner_nc, submodule=submodule)

        # downconv: Conv2d(input_nc, inner_nc, 4, 2, 1, bias=False)   (BatchNorm -> no bias)
        wd = _uniform(next(keys), (inner_nc, block_input_nc, 4, 4), block_input_nc * 16)
        blk["down_w"] = wd
        blk["down_w_prep"] = _prep_down_weight(wd).astype(MXU_DTYPE)
        blk["down_bn"] = (None if (outermost or innermost)
                          else (jnp.ones((inner_nc,), jnp.float32),
                                jnp.zeros((inner_nc,), jnp.float32)))

        # upconv
        in_ch = inner_nc if innermost else inner_nc * 2
        wu = _uniform(next(keys), (in_ch, outer_nc, 4, 4), in_ch * 16)
        blk["up_w"] = wu
        if innermost:
            blk["up_w_prep"] = [_prep_up_weight(wu).astype(MXU_DTYPE)]
        else:
            blk["up_w_prep"] = [_prep_up_weight(wu[:inner_nc]).astype(MXU_DTYPE),
                                _prep_up_weight(wu[inner_nc:]).astype(MXU_DTYPE)]
        if outermost:
            bu = _uniform(next(keys), (outer_nc,), in_ch * 16)
            blk["up_b"] = bu
            blk["up_b_eff"] = jnp.tile(bu, 4).reshape(1, 4 * outer_nc)
            blk["up_bn"] = None
        else:
            blk["up_b"] = None
            blk["up_b_eff"] = None
            blk["up_bn"] = (jnp.ones((outer_nc,), jnp.float32),
                            jnp.zeros((outer_nc,), jnp.float32))

        if self_attention and not (outermost or innermost):
            blk["down_attn"] = _attn_init(next(keys), inner_nc)
            blk["up_attn"] = _attn_init(next(keys), outer_nc)
        else:
            blk["down_attn"] = None
            blk["up_attn"] = None
        return blk

    blk = make_block(ngf * 8, ngf * 8, innermost=True)
    for i in range(num_downs - 5):
        blk = make_block(ngf * 8, ngf * 8, submodule=blk, self_attention=(i % 2 == 0))
    blk = make_block(ngf * 4, ngf * 8, submodule=blk, self_attention=False)
    blk = make_block(ngf * 2, ngf * 4, submodule=blk, self_attention=True)
    blk = make_block(ngf, ngf * 2, submodule=blk)
    blk = make_block(output_nc, ngf, block_input_nc=input_nc, submodule=blk,
                     outermost=True)
    return blk


# --------------------------------------------------------------------------------------
# U-Net forward (Pallas).  Tensors travel as (raw, scale, shift) with a pending
# per-channel BatchNorm affine that is applied inside the consuming kernel.
# --------------------------------------------------------------------------------------
def _run_block_pallas(blk, seg_in):
    inner_nc, outer_nc = blk["inner_nc"], blk["outer_nc"]
    outermost, innermost = blk["outermost"], blk["innermost"]
    N = seg_in[0].shape[0]

    # ---- down path ----
    act = None if outermost else "lrelu"
    want_d_stats = blk["down_bn"] is not None
    d_raw, d_stats = _down_conv(seg_in, blk["down_w_prep"], act=act,
                                want_stats=want_d_stats)
    Hd, Wd = d_raw.shape[1], d_raw.shape[2]
    if want_d_stats:
        d_scale, d_shift = _bn_scale_shift(d_stats, N * Hd * Wd, *blk["down_bn"])
    else:
        d_scale, d_shift = _identity_affine(inner_nc)
    if blk["down_attn"] is not None:
        d_act = _self_attn(d_raw, d_scale, d_shift, blk["down_attn"])
        d_seg = (d_act,) + _identity_affine(inner_nc)
    else:
        d_seg = (d_raw, d_scale, d_shift)

    # ---- submodule ----
    sub_segs = [d_seg] if innermost else _run_block_pallas(blk["submodule"], d_seg)

    # ---- up path ----
    want_u_stats = blk["up_bn"] is not None
    u, u_stats = _up_conv(sub_segs, blk["up_w_prep"], outer_nc,
                          bias=blk["up_b_eff"], out_tanh=outermost,
                          want_stats=want_u_stats)
    if outermost:
        return u                                        # final NHWC tensor

    Hu, Wu = u.shape[1], u.shape[2]
    u_scale, u_shift = _bn_scale_shift(u_stats, N * Hu * Wu, *blk["up_bn"])
    if blk["up_attn"] is not None:
        u_act = _self_attn(u, u_scale, u_shift, blk["up_attn"])
        u_seg = (u_act,) + _identity_affine(outer_nc)
    else:
        u_seg = (u, u_scale, u_shift)
    # torch: return cat([x, model(x)], 1) -> keep the two segments separate (no HBM cat).
    return [seg_in, u_seg]


def unet_forward_pallas(params, x_nchw):
    x = jnp.transpose(x_nchw, (0, 2, 3, 1))             # NCHW -> NHWC once
    cin = x.shape[-1]
    out = _run_block_pallas(params, (x,) + _identity_affine(cin))
    return jnp.transpose(out, (0, 3, 1, 2))             # back to NCHW


# --------------------------------------------------------------------------------------
# Pure-JAX reference (torch semantics, NCHW) for correctness checking.
# Operands are rounded to MXU_DTYPE before convs to mirror the kernel's bf16 MXU path.
# --------------------------------------------------------------------------------------
def _q(x):
    return x.astype(MXU_DTYPE).astype(jnp.float32)


def _ref_conv_down(x, w):
    return lax.conv_general_dilated(_q(x), _q(w), window_strides=(2, 2),
                                    padding=((1, 1), (1, 1)),
                                    dimension_numbers=("NCHW", "OIHW", "NCHW"),
                                    preferred_element_type=jnp.float32)


def _ref_conv_up(x, w):
    wf = jnp.flip(w, axis=(2, 3)).transpose(1, 0, 2, 3)
    return lax.conv_general_dilated(_q(x), _q(wf), window_strides=(1, 1),
                                    padding=((2, 2), (2, 2)), lhs_dilation=(2, 2),
                                    dimension_numbers=("NCHW", "OIHW", "NCHW"),
                                    preferred_element_type=jnp.float32)


def _ref_bn(y, gamma, beta):
    mean = y.mean(axis=(0, 2, 3), keepdims=True)
    var = ((y - mean) ** 2).mean(axis=(0, 2, 3), keepdims=True)
    yn = (y - mean) * lax.rsqrt(var + BN_EPS)
    return yn * gamma[None, :, None, None] + beta[None, :, None, None]


def _ref_attn(x, p):
    N, C, H, W = x.shape
    xn = x.reshape(N, C, H * W).transpose(0, 2, 1)       # (N, HW, C)
    q = xn @ p["wq"] + p["bq"]
    k = xn @ p["wk"] + p["bk"]
    v = xn @ p["wv"] + p["bv"]
    e = jnp.einsum("nid,njd->nij", q, k)
    a = jax.nn.softmax(e, axis=-1)
    out = jnp.einsum("nij,njc->nic", a, v)
    res = p["gamma"][0, 0] * out + xn
    return res.transpose(0, 2, 1).reshape(N, C, H, W)


def _ref_block(blk, x):
    lrelu = lambda t: jnp.where(t > 0, t, LRELU_SLOPE * t)
    relu = lambda t: jnp.maximum(t, 0.0)
    if blk["outermost"]:
        d = _ref_conv_down(x, blk["down_w"])
        s = _ref_block(blk["submodule"], d)
        u = _ref_conv_up(relu(s), blk["up_w"]) + blk["up_b"][None, :, None, None]
        return jnp.tanh(u)
    if blk["innermost"]:
        d = _ref_conv_down(lrelu(x), blk["down_w"])
        u = _ref_bn(_ref_conv_up(relu(d), blk["up_w"]), *blk["up_bn"])
        return jnp.concatenate([x, u], axis=1)
    d = _ref_bn(_ref_conv_down(lrelu(x), blk["down_w"]), *blk["down_bn"])
    if blk["down_attn"] is not None:
        d = _ref_attn(d, blk["down_attn"])
    s = _ref_block(blk["submodule"], d)
    u = _ref_bn(_ref_conv_up(relu(s), blk["up_w"]), *blk["up_bn"])
    if blk["up_attn"] is not None:
        u = _ref_attn(u, blk["up_attn"])
    return jnp.concatenate([x, u], axis=1)


def unet_forward_ref(params, x_nchw):
    return _ref_block(params, x_nchw)


# --------------------------------------------------------------------------------------
if __name__ == "__main__":
    key = jax.random.PRNGKey(0)
    kp, kx = jax.random.split(key)

    # Small but structurally complete config: num_downs=5 requires spatial >= 2^5.
    input_nc, output_nc, num_downs, ngf = 3, 3, 5, 8
    N, H, W = 2, 32, 32

    params = init_unet(kp, input_nc, output_nc, num_downs, ngf)
    x = jax.random.normal(kx, (N, input_nc, H, W), jnp.float32)

    out = jax.block_until_ready(unet_forward_pallas(params, x))
    assert out.shape == (N, output_nc, H, W)

    ref = jax.block_until_ready(unet_forward_ref(params, x))
    max_err = float(jnp.max(jnp.abs(out - ref)))
    assert jnp.allclose(out, ref, atol=2e-2, rtol=2e-2), (
        f"mismatch vs JAX reference, max abs err={max_err}")

    print("KERNEL_OK")
</pallas_src>

<mosaic_0001>
module attributes {stable_mosaic.version = 11 : i64} {
  func.func @kernel(%arg0: i32, %arg1: memref<1x16x16x12xf32, #tpu.memory_space<vmem>>, %arg2: memref<1x12xf32, #tpu.memory_space<vmem>>, %arg3: memref<1x12xf32, #tpu.memory_space<vmem>>, %arg4: memref<3x36x8xbf16, #tpu.memory_space<vmem>>, %arg5: memref<1x16x16x8xf32, #tpu.memory_space<vmem>>) attributes {dimension_semantics = [#tpu.dimension_semantics<parallel>], iteration_bounds = array<i64: 2>, scalar_prefetch = 0 : i64, scratch_operands = 0 : i64, tpu.core_type = #tpu.core_type<tc>, window_params = [{transform_indices = @transform_0, window_bounds = array<i64: 1, 16, 16, 12>}, {pipeline_mode = #tpu.pipeline_mode<synchronous>, transform_indices = @transform_1, window_bounds = array<i64: 1, 12>}, {pipeline_mode = #tpu.pipeline_mode<synchronous>, transform_indices = @transform_2, window_bounds = array<i64: 1, 12>}, {pipeline_mode = #tpu.pipeline_mode<synchronous>, transform_indices = @transform_3, window_bounds = array<i64: 3, 36, 8>}, {transform_indices = @transform_4, window_bounds = array<i64: 1, 16, 16, 8>}]} {
    %cst = arith.constant 0.000000e+00 : f32
    %0 = vector.broadcast %cst : f32 to vector<256x8xf32>
    %c0 = arith.constant 0 : index
    %c0_0 = arith.constant 0 : index
    %c0_1 = arith.constant 0 : index
    %c0_2 = arith.constant 0 : index
    %1 = vector.load %arg1[%c0, %c0_0, %c0_1, %c0_2] : memref<1x16x16x12xf32, #tpu.memory_space<vmem>>, vector<1x16x16x12xf32>
    %2 = vector.shape_cast %1 : vector<1x16x16x12xf32> to vector<16x16x12xf32>
    %c0_3 = arith.constant 0 : index
    %c0_4 = arith.constant 0 : index
    %3 = vector.load %arg2[%c0_3, %c0_4] : memref<1x12xf32, #tpu.memory_space<vmem>>, vector<1x12xf32>
    %4 = vector.shape_cast %3 : vector<1x12xf32> to vector<1x1x12xf32>
    %c0_5 = arith.constant 0 : index
    %c0_6 = arith.constant 0 : index
    %5 = vector.load %arg3[%c0_5, %c0_6] : memref<1x12xf32, #tpu.memory_space<vmem>>, vector<1x12xf32>
    %6 = vector.shape_cast %5 : vector<1x12xf32> to vector<1x1x12xf32>
    %7 = vector.broadcast %4 : vector<1x1x12xf32> to vector<16x16x12xf32>
    %8 = arith.mulf %2, %7 : vector<16x16x12xf32>
    %9 = vector.broadcast %6 : vector<1x1x12xf32> to vector<16x16x12xf32>
    %10 = arith.addf %8, %9 : vector<16x16x12xf32>
    %cst_7 = arith.constant 0.000000e+00 : f32
    %11 = vector.broadcast %cst_7 : f32 to vector<1x16x12xf32>
    %cst_8 = arith.constant 0.000000e+00 : f32
    %12 = vector.broadcast %cst_8 : f32 to vector<18x1x12xf32>
    %13 = tpu.concatenate %11, %10, %11 in 0 : vector<1x16x12xf32>, vector<16x16x12xf32>, vector<1x16x12xf32> -> vector<18x16x12xf32>
    %14 = tpu.concatenate %12, %13, %12 in 1 : vector<18x1x12xf32>, vector<18x16x12xf32>, vector<18x1x12xf32> -> vector<18x18x12xf32>
    %15 = vector.extract_strided_slice %14 {offsets = [0, 0, 0], sizes = [16, 18, 12], strides = [1, 1, 1]} : vector<18x18x12xf32> to vector<16x18x12xf32>
    %16 = vector.extract_strided_slice %15 {offsets = [0, 0, 0], sizes = [16, 16, 12], strides = [1, 1, 1]} : vector<16x18x12xf32> to vector<16x16x12xf32>
    %17 = vector.extract_strided_slice %15 {offsets = [0, 1, 0], sizes = [16, 16, 12], strides = [1, 1, 1]} : vector<16x18x12xf32> to vector<16x16x12xf32>
    %18 = vector.extract_strided_slice %15 {offsets = [0, 2, 0], sizes = [16, 16, 12], strides = [1, 1, 1]} : vector<16x18x12xf32> to vector<16x16x12xf32>
    %19 = tpu.concatenate %16, %17, %18 in 2 : vector<16x16x12xf32>, vector<16x16x12xf32>, vector<16x16x12xf32> -> vector<16x16x36xf32>
    %20 = vector.shape_cast %19 : vector<16x16x36xf32> to vector<256x36xf32>
    %21 = arith.truncf %20 : vector<256x36xf32> to vector<256x36xbf16>
    %c0_9 = arith.constant 0 : index
    %c0_10 = arith.constant 0 : index
    %c0_11 = arith.constant 0 : index
    %22 = vector.load %arg4[%c0_9, %c0_10, %c0_11] : memref<3x36x8xbf16, #tpu.memory_space<vmem>>, vector<1x36x8xbf16>
    %23 = vector.shape_cast %22 : vector<1x36x8xbf16> to vector<36x8xbf16>
    %cst_12 = arith.constant dense<0.000000e+00> : vector<256x8xf32>
    %24 = tpu.matmul %21, %23, %cst_12 {dimension_numbers = #tpu.dot_dimension_numbers<[1], [0], [0], [1], [0, 0, 1, 1], [], []>} : vector<256x36xbf16>, vector<36x8xbf16>, vector<256x8xf32> -> vector<256x8xf32>
    %25 = arith.addf %0, %24 : vector<256x8xf32>
    %26 = vector.extract_strided_slice %14 {offsets = [1, 0, 0], sizes = [16, 18, 12], strides = [1, 1, 1]} : vector<18x18x12xf32> to vector<16x18x12xf32>
    %27 = vector.extract_strided_slice %26 {offsets = [0, 0, 0], sizes = [16, 16, 12], strides = [1, 1, 1]} : vector<16x18x12xf32> to vector<16x16x12xf32>
    %28 = vector.extract_strided_slice %26 {offsets = [0, 1, 0], sizes = [16, 16, 12], strides = [1, 1, 1]} : vector<16x18x12xf32> to vector<16x16x12xf32>
    %29 = vector.extract_strided_slice %26 {offsets = [0, 2, 0], sizes = [16, 16, 12], strides = [1, 1, 1]} : vector<16x18x12xf32> to vector<16x16x12xf32>
    %30 = tpu.concatenate %27, %28, %29 in 2 : vector<16x16x12xf32>, vector<16x16x12xf32>, vector<16x16x12xf32> -> vector<16x16x36xf32>
    %31 = vector.shape_cast %30 : vector<16x16x36xf32> to vector<256x36xf32>
    %32 = arith.truncf %31 : vector<256x36xf32> to vector<256x36xbf16>
    %c1 = arith.constant 1 : index
    %c0_13 = arith.constant 0 : index
    %c0_14 = arith.constant 0 : index
    %33 = vector.load %arg4[%c1, %c0_13, %c0_14] : memref<3x36x8xbf16, #tpu.memory_space<vmem>>, vector<1x36x8xbf16>
    %34 = vector.shape_cast %33 : vector<1x36x8xbf16> to vector<36x8xbf16>
    %cst_15 = arith.constant dense<0.000000e+00> : vector<256x8xf32>
    %35 = tpu.matmul %32, %34, %cst_15 {dimension_numbers = #tpu.dot_dimension_numbers<[1], [0], [0], [1], [0, 0, 1, 1], [], []>} : vector<256x36xbf16>, vector<36x8xbf16>, vector<256x8xf32> -> vector<256x8xf32>
    %36 = arith.addf %25, %35 : vector<256x8xf32>
    %37 = vector.extract_strided_slice %14 {offsets = [2, 0, 0], sizes = [16, 18, 12], strides = [1, 1, 1]} : vector<18x18x12xf32> to vector<16x18x12xf32>
    %38 = vector.extract_strided_slice %37 {offsets = [0, 0, 0], sizes = [16, 16, 12], strides = [1, 1, 1]} : vector<16x18x12xf32> to vector<16x16x12xf32>
    %39 = vector.extract_strided_slice %37 {offsets = [0, 1, 0], sizes = [16, 16, 12], strides = [1, 1, 1]} : vector<16x18x12xf32> to vector<16x16x12xf32>
    %40 = vector.extract_strided_slice %37 {offsets = [0, 2, 0], sizes = [16, 16, 12], strides = [1, 1, 1]} : vector<16x18x12xf32> to vector<16x16x12xf32>
    %41 = tpu.concatenate %38, %39, %40 in 2 : vector<16x16x12xf32>, vector<16x16x12xf32>, vector<16x16x12xf32> -> vector<16x16x36xf32>
    %42 = vector.shape_cast %41 : vector<16x16x36xf32> to vector<256x36xf32>
    %43 = arith.truncf %42 : vector<256x36xf32> to vector<256x36xbf16>
    %c2 = arith.constant 2 : index
    %c0_16 = arith.constant 0 : index
    %c0_17 = arith.constant 0 : index
    %44 = vector.load %arg4[%c2, %c0_16, %c0_17] : memref<3x36x8xbf16, #tpu.memory_space<vmem>>, vector<1x36x8xbf16>
    %45 = vector.shape_cast %44 : vector<1x36x8xbf16> to vector<36x8xbf16>
    %cst_18 = arith.constant dense<0.000000e+00> : vector<256x8xf32>
    %46 = tpu.matmul %43, %45, %cst_18 {dimension_numbers = #tpu.dot_dimension_numbers<[1], [0], [0], [1], [0, 0, 1, 1], [], []>} : vector<256x36xbf16>, vector<36x8xbf16>, vector<256x8xf32> -> vector<256x8xf32>
    %47 = arith.addf %36, %46 : vector<256x8xf32>
    %48 = vector.shape_cast %47 : vector<256x8xf32> to vector<16x16x8xf32>
    %c0_19 = arith.constant 0 : index
    %c0_20 = arith.constant 0 : index
    %c0_21 = arith.constant 0 : index
    %c0_22 = arith.constant 0 : index
    %49 = vector.load %arg5[%c0_19, %c0_20, %c0_21, %c0_22] : memref<1x16x16x8xf32, #tpu.memory_space<vmem>>, vector<1x16x16x8xf32>
    %50 = vector.shape_cast %49 : vector<1x16x16x8xf32> to vector<16x16x8xf32>
    %51 = vector.shape_cast %48 : vector<16x16x8xf32> to vector<1x16x16x8xf32>
    tpu.vector_store %arg5[%c0_19, %c0_20, %c0_21, %c0_22], %51 {strides = array<i32>} : memref<1x16x16x8xf32, #tpu.memory_space<vmem>>, vector<1x16x16x8xf32>,
    return
  }
  func.func @transform_0(%arg0: i32) -> (i32, i32, i32, i32) {
    %c0_i32 = arith.constant 0 : i32
    %c0_i32_0 = arith.constant 0 : i32
    %c0_i32_1 = arith.constant 0 : i32
    %c0_i32_2 = arith.constant 0 : i32
    return %arg0, %c0_i32, %c0_i32_0, %c0_i32_1 : i32, i32, i32, i32
  }
  func.func @transform_1(%arg0: i32) -> (i32, i32) {
    %c0_i32 = arith.constant 0 : i32
    %c0_i32_0 = arith.constant 0 : i32
    %c0_i32_1 = arith.constant 0 : i32
    return %c0_i32, %c0_i32_0 : i32, i32
  }
  func.func @transform_2(%arg0: i32) -> (i32, i32) {
    %c0_i32 = arith.constant 0 : i32
    %c0_i32_0 = arith.constant 0 : i32
    %c0_i32_1 = arith.constant 0 : i32
    return %c0_i32, %c0_i32_0 : i32, i32
  }
  func.func @transform_3(%arg0: i32) -> (i32, i32, i32) {
    %c0_i32 = arith.constant 0 : i32
    %c0_i32_0 = arith.constant 0 : i32
    %c0_i32_1 = arith.constant 0 : i32
    %c0_i32_2 = arith.constant 0 : i32
    return %c0_i32, %c0_i32_0, %c0_i32_1 : i32, i32, i32
  }
  func.func @transform_4(%arg0: i32) -> (i32, i32, i32, i32) {
    %c0_i32 = arith.constant 0 : i32
    %c0_i32_0 = arith.constant 0 : i32
    %c0_i32_1 = arith.constant 0 : i32
    %c0_i32_2 = arith.constant 0 : i32
    return %arg0, %c0_i32, %c0_i32_0, %c0_i32_1 : i32, i32, i32, i32
  }
}

</mosaic_0001>

<bundles_post_ra>
// kernel: tpu_custom_call.1
= control target key start
LH: loop header
LB: loop body
LE: loop exit
PB: predicated region body
PF: predicated region fallthrough
CT: control target
= control target key end

     0   :  { %s2190_s15 = smov 0   ;;  %s3008_s0 = inlined_call_operand.vmem [shape: f32[2,16,16,12], index: 0, kind: input, shape index: {}]   ;;  %s3009_s1 = inlined_call_operand.vmem [shape: f32[1,12], index: 1, kind: input, shape index: {}]   ;;  %s3010_s2 = inlined_call_operand.vmem [shape: f32[1,12], index: 2, kind: input, shape index: {}]   ;;  %s3011_s3 = inlined_call_operand.vmem [shape: bf16[3,36,8], index: 3, kind: input, shape index: {}]   ;;  %s3012_s4 = inlined_call_operand.vmem [shape: f32[2,16,16,8], index: 4, kind: output, shape index: {}]  }
   0x1 LB: > { %s1701_s16 = sadd.s32 4294967295, %s2160_s15   ;;  %p1705_p0 = scmp.ge.s32.totalorder %s2160_s15, 1  ;;  %s2160_s15 = sphi %s2190_s15, %s14_s15  }
   0x2   : > { %p162_p1 = scmp.lt.s32.totalorder %s2160_s15, 3 }
   0x4   : > { %p163_p2 = pnand %p1705_p0, %p162_p1 }
   0x5   : > { %p188_p3 = scmp.lt.s32.totalorder (!%p163_p2), %s1701_s16, 1  ;;  %s2163_s25 = smov (!%p163_p2), 24  }
   0x6   : > { %166 = sbr.rel (%p163_p2) target bundleno = 493 (0x1ed), region = 36  ;;  %s2164_s26 = smov (!%p163_p2), 12  }
   0xb   : > { %vm342_vm0 = vcmask 1040384   ;;  %s3014_s16 = smov (!%p188_p3, %s1701_s16), 1  ;;  %v2162_v0 = vmov 0.0   ;;  %v2206_v2 = vld [vmem:[%s3009_s1] ss:$0 sm:$0xff]  ;;  %vm686_vm1 = vcmask 1045504  }
   0xc   : > { %v2200_v1 = vrot.slane %v2162_v0, 7  ;;  %s1781_s17 = sshll.u32 %s3014_s16, 8  ;;  %v2226_v5 = vld [vmem:[%s3010_s2] ss:$0 sm:$0xff]  ;;  %vm509_vm2 = vcmask 1046528   ;;  %vm1049_vm3 = vcmask 1041408  }
   0xd   : > { %s2221_s22 = scalar_lea.vmem %s3008_s0, %s1781_s17  ;;  %vm863_vm4 = vcmask 97280   ;;  %vm896_vm5 = vcmask 195584   ;;  %vm1000_vm6 = vcmask 293888   ;;  %s2919_s24 = scalar_lea.vmem %s3012_s4, %s1781_s17  ;;  %vm1613_vm7 = vcmask 64512  }
   0xe   : > { %v2210_v3 = vsel %vm342_vm0, 0.0, %v2200_v1  ;;  %v2214_v4 = vsel %vm342_vm0, %v2200_v1, 0.0  ;;  %v215_v6 = vld [vmem:[%s2221_s22 + $0x80] sm:$0xff]  ;;  %v216_v7 = vld [vmem:[%s2221_s22 + $0x88] sm:$0xff]  ;;  %v217_v8 = vld [vmem:[%s2221_s22 + $0x90] sm:$0xff]  ;;  %v511_v10 = vrot.slane %v2200_v1, 1 }
   0xf   : > { %v510_v9 = vrot.slane %v2210_v3, 1  ;;  %v688_v11 = vrot.slane %v2200_v1, 2  ;;  %v255_v12 = vmul.f32 %v2206_v2, %v215_v6  ;;  %v256_v13 = vmul.f32 %v2206_v2, %v216_v7  ;;  %v218_v14 = vld [vmem:[%s2221_s22 + $0x98] sm:$0xff]  ;;  %v199_v16 = vld [vmem:[%s2221_s22] sm:$0xff]  ;;  %v200_v17 = vld [vmem:[%s2221_s22 + $0x8] sm:$0xff] }
  0x10   : > { %v257_v15 = vmul.f32 %v2206_v2, %v217_v8  ;;  %v513_v18 = vrot.slane %v2214_v4, 1  ;;  %v258_v19 = vmul.f32 %v2206_v2, %v218_v14  ;;  %v239_v20 = vmul.f32 %v2206_v2, %v199_v16  ;;  %v201_v22 = vld [vmem:[%s2221_s22 + $0x10] sm:$0xff]  ;;  %v202_v23 = vld [vmem:[%s2221_s22 + $0x18] sm:$0xff] }
  0x11   : > { %v240_v21 = vmul.f32 %v2206_v2, %v200_v17  ;;  %v687_v24 = vrot.slane %v2210_v3, 2  ;;  %v293_v25 = vadd.f32 %v2226_v5, %v255_v12  ;;  %v294_v26 = vadd.f32 %v2226_v5, %v256_v13 }
  0x12   : > { %v295_v27 = vadd.f32 %v2226_v5, %v257_v15  ;;  %v241_v28 = vmul.f32 %v2206_v2, %v201_v22  ;;  %v296_v29 = vadd.f32 %v2226_v5, %v258_v19  ;;  %v277_v30 = vadd.f32 %v2226_v5, %v239_v20 }
  0x13   : > { %v278_v31 = vadd.f32 %v2226_v5, %v240_v21  ;;  %v242_v32 = vmul.f32 %v2206_v2, %v202_v23  ;;  %v369_v33 = vrot.slane %v293_v25, 7  ;;  %v370_v34 = vrot.slane %v294_v26, 7 }
  0x14   : > { %v372_v35 = vrot.slane %v295_v27, 7  ;;  %v279_v36 = vadd.f32 %v2226_v5, %v241_v28  ;;  %v373_v37 = vrot.slane %v296_v29, 7  ;;  %v345_v38 = vrot.slane %v277_v30, 7 }
  0x15   : > { %v346_v39 = vrot.slane %v278_v31, 7  ;;  %v280_v40 = vadd.f32 %v2226_v5, %v242_v32  ;;  %v2258_v41 = vsel %vm342_vm0, %v369_v33, %v370_v34  ;;  %v2261_v42 = vsel %vm342_vm0, 0.0, %v369_v33  ;;  %v219_v31 = vld [vmem:[%s2221_s22 + $0xa0] sm:$0xff] }
  0x16   : > { %v469_v43 = vsel %vm342_vm0, %v370_v34, 0.0  ;;  %v2265_v44 = vsel %vm342_vm0, 0.0, %v372_v35  ;;  %v732_v45 = vrot.slane %v2261_v42, 2  ;;  %v733_v46 = vrot.slane %v2258_v41, 2 }
  0x17   : > { %v735_v47 = vrot.slane %v469_v43, 2  ;;  %v555_v48 = vrot.slane %v2261_v42, 1  ;;  %v556_v49 = vrot.slane %v2258_v41, 1  ;;  %v558_v50 = vrot.slane %v469_v43, 1 }
  0x18   : > { %v2272_v51 = vsel %vm342_vm0, %v372_v35, %v373_v37  ;;  %v470_v52 = vsel %vm342_vm0, %v373_v37, 0.0  ;;  %v734_v53 = vsel %vm686_vm1, %v732_v45, %v733_v46  ;;  %v560_v55 = vrot.slane %v2265_v44, 1  ;;  %v221_v37 = vld [vmem:[%s2221_s22 + $0xb0] sm:$0xff] }
  0x19   : > { %v736_v54 = vsel %vm686_vm1, %v733_v46, %v735_v47  ;;  %v561_v56 = vrot.slane %v2272_v51, 1  ;;  %v557_v58 = vsel %vm509_vm2, %v555_v48, %v556_v49  ;;  %v559_v59 = vsel %vm509_vm2, %v556_v49, %v558_v50  ;;  %v222_v49 = vld [vmem:[%s2221_s22 + $0xb8] sm:$0xff] }
  0x1a   : > { %v1985_v57 = vpack.i.bf16 %v736_v54, %v734_v53  ;;  %v563_v60 = vrot.slane %v470_v52, 1  ;;  %v1975_v61 = vpack.i.bf16 %v559_v59, %v557_v58  ;;  %v2283_v63 = vsel %vm342_vm0, %v345_v38, %v346_v39 }
  0x1b   : > { %v562_v62 = vsel %vm509_vm2, %v560_v55, %v561_v56  ;;  %v2286_v0 = vsel %vm342_vm0, 0.0, %v345_v38  ;;  %v461_v7 = vsel %vm342_vm0, %v346_v39, 0.0  ;;  %v516_v12 = vrot.slane %v2283_v63, 1  ;;  %v203_v55 = vld [vmem:[%s2221_s22 + $0x20] sm:$0xff] }
  0x1c   : > { %1986 = vrot.lane.b32.xlu1 %v1985_v57, %s2163_s25  ;;  %v564_v6 = vsel %vm509_vm2, %v561_v56, %v563_v60  ;;  %v515_v8 = vrot.slane %v2286_v0, 1  ;;  %1976 = vrot.lane.b32.xlu0 %v1975_v61, %s2164_s26  ;;  %v518_v14 = vrot.slane %v461_v7, 1  ;;  %v737_v15 = vrot.slane %v2265_v44, 2  ;;  %v204_v56 = vld [vmem:[%s2221_s22 + $0x28] sm:$0xff]  ;;  %v205_v57 = vld [vmem:[%s2221_s22 + $0x30] sm:$0xff] }
  0x1d   : > { %v1980_v13 = vpack.i.bf16 %v564_v6, %v562_v62  ;;  %v738_v16 = vrot.slane %v2272_v51, 2  ;;  %v740_v19 = vrot.slane %v470_v52, 2  ;;  %v348_v20 = vrot.slane %v279_v36, 7  ;;  %v220_v36 = vld [vmem:[%s2221_s22 + $0xa8] sm:$0xff]  ;;  %v206_v62 = vld [vmem:[%s2221_s22 + $0x38] sm:$0xff] }
  0x1e   : > { %v517_v17 = vsel %vm509_vm2, %v515_v8, %v516_v12  ;;  %v349_v21 = vrot.slane %v280_v40, 7  ;;  %v519_v22 = vsel %vm509_vm2, %v516_v12, %v518_v14  ;;  %v692_v25 = vrot.slane %v2286_v0, 2 }
  0x1f   : > { %v739_v23 = vsel %vm686_vm1, %v737_v15, %v738_v16  ;;  %v693_v26 = vrot.slane %v2283_v63, 2  ;;  %v1990_v27 = vpack.i.bf16 %v519_v22, %v517_v17  ;;  %v741_v28 = vsel %vm686_vm1, %v738_v16, %v740_v19 }
  0x20   : > { %v2303_v29 = vsel %vm342_vm0, %v348_v20, %v349_v21  ;;  %v2306_v30 = vsel %vm342_vm0, 0.0, %v348_v20  ;;  %1981 = vrot.lane.b32.xlu0 %v1980_v13, %s2164_s26  ;;  %v1995_v32 = vpack.i.bf16 %v741_v28, %v739_v23  ;;  %v462_v33 = vsel %vm342_vm0, %v349_v21, 0.0 }
  0x21   : > { %v520_v34 = vrot.slane %v2306_v30, 1  ;;  %v521_v35 = vrot.slane %v2303_v29, 1  ;;  %1991 = vrot.lane.b32.xlu1 %v1990_v27, %s2164_s26  ;;  %v523_v38 = vrot.slane %v462_v33, 1  ;;  %v694_v39 = vsel %vm686_vm1, %v692_v25, %v693_v26 }
  0x22   : > { %v695_v40 = vrot.slane %v461_v7, 2  ;;  %v697_v43 = vrot.slane %v2306_v30, 2  ;;  %v698_v46 = vrot.slane %v2303_v29, 2  ;;  %v700_v47 = vrot.slane %v462_v33, 2 }
  0x23   : > { %v522_v45 = vsel %vm509_vm2, %v520_v34, %v521_v35  ;;  %v259_v48 = vmul.f32 %v2206_v2, %v219_v31  ;;  %v524_v50 = vsel %vm509_vm2, %v521_v35, %v523_v38  ;;  %v260_v53 = vmul.f32 %v2206_v2, %v220_v36 }
  0x24   : > { %v696_v52 = vsel %vm686_vm1, %v693_v26, %v695_v40  ;;  %v261_v54 = vmul.f32 %v2206_v2, %v221_v37  ;;  %1996 = vrot.lane.b32.xlu0 %v1995_v32, %s2163_s25  ;;  %v2000_v58 = vpack.i.bf16 %v524_v50, %v522_v45  ;;  %v699_v60 = vsel %vm686_vm1, %v697_v43, %v698_v46 }
  0x25   : > { %v2005_v59 = vpack.i.bf16 %v696_v52, %v694_v39  ;;  %v701_v61 = vsel %vm686_vm1, %v698_v46, %v700_v47  ;;  %v297_v7 = vadd.f32 %v2226_v5, %v259_v48  ;;  %v298_v8 = vadd.f32 %v2226_v5, %v260_v53 }
  0x26   : > { %v2010_v6 = vpack.i.bf16 %v701_v61, %v699_v60  ;;  %v262_v12 = vmul.f32 %v2206_v2, %v222_v49  ;;  %2001 = vrot.lane.b32.xlu1 %v2000_v58, %s2164_s26  ;;  %v299_v13 = vadd.f32 %v2226_v5, %v261_v54  ;;  %v243_v14 = vmul.f32 %v2206_v2, %v203_v55 }
  0x27   : > { %v244_v15 = vmul.f32 %v2206_v2, %v204_v56  ;;  %v245_v16 = vmul.f32 %v2206_v2, %v205_v57  ;;  %v375_v17 = vrot.slane %v297_v7, 7  ;;  %v376_v19 = vrot.slane %v298_v8, 7 }
  0x28   : > { %v300_v20 = vadd.f32 %v2226_v5, %v262_v12  ;;  %v246_v21 = vmul.f32 %v2206_v2, %v206_v62  ;;  %2006 = vrot.lane.b32.xlu0 %v2005_v59, %s2163_s25  ;;  %v378_v22 = vrot.slane %v299_v13, 7  ;;  %v281_v23 = vadd.f32 %v2226_v5, %v243_v14 }
  0x29   : > { %v282_v25 = vadd.f32 %v2226_v5, %v244_v15  ;;  %v283_v26 = vadd.f32 %v2226_v5, %v245_v16  ;;  %v2348_v27 = vsel %vm342_vm0, %v375_v17, %v376_v19  ;;  %v2351_v28 = vsel %vm342_vm0, 0.0, %v375_v17 }
  0x2a   : > { %v471_v31 = vsel %vm342_vm0, %v376_v19, 0.0  ;;  %v379_v32 = vrot.slane %v300_v20, 7  ;;  %2011 = vrot.lane.b32.xlu1 %v2010_v6, %s2163_s25  ;;  %v565_v33 = vrot.slane %v2351_v28, 1  ;;  %v566_v34 = vrot.slane %v2348_v27, 1 }
  0x2b   : > { %v568_v35 = vrot.slane %v471_v31, 1  ;;  %v2358_v36 = vsel %vm342_vm0, 0.0, %v378_v22  ;;  %v742_v40 = vrot.slane %v2351_v28, 2  ;;  %v743_v49 = vrot.slane %v2348_v27, 2 }
  0x2c   : > { %v2361_v37 = vsel %vm342_vm0, %v378_v22, %v379_v32  ;;  %v472_v38 = vsel %vm342_vm0, %v379_v32, 0.0  ;;  %v570_v39 = vrot.slane %v2358_v36, 1  ;;  %v567_v43 = vsel %vm509_vm2, %v565_v33, %v566_v34  ;;  %v224_v32 = vld [vmem:[%s2221_s22 + $0xc8] sm:$0xff] }
  0x2d   : > { %v569_v45 = vsel %vm509_vm2, %v566_v34, %v568_v35  ;;  %v571_v46 = vrot.slane %v2361_v37, 1  ;;  %v573_v47 = vrot.slane %v472_v38, 1  ;;  %v745_v50 = vrot.slane %v471_v31, 2  ;;  %v223_v31 = vld [vmem:[%s2221_s22 + $0xc0] sm:$0xff] }
  0x2e   : > { %v2015_v48 = vpack.i.bf16 %v569_v45, %v567_v43  ;;  %v351_v52 = vrot.slane %v281_v23, 7  ;;  %v352_v55 = vrot.slane %v282_v25, 7  ;;  %v747_v56 = vrot.slane %v2358_v36, 2 }
  0x2f   : > { %v572_v53 = vsel %vm509_vm2, %v570_v39, %v571_v46  ;;  %v574_v54 = vsel %vm509_vm2, %v571_v46, %v573_v47  ;;  %v744_v58 = vsel %vm686_vm1, %v742_v40, %v743_v49  ;;  %v746_v59 = vsel %vm686_vm1, %v743_v49, %v745_v50 }
  0x30   : > { %2016 = vrot.lane.b32.xlu0 %v2015_v48, %s2164_s26  ;;  %v2020_v57 = vpack.i.bf16 %v574_v54, %v572_v53  ;;  %v2377_v60 = vsel %vm342_vm0, 0.0, %v351_v52  ;;  %v2025_v61 = vpack.i.bf16 %v746_v59, %v744_v58  ;;  %v2380_v62 = vsel %vm342_vm0, %v351_v52, %v352_v55  ;;  %v225_v48 = vld [vmem:[%s2221_s22 + $0xd0] sm:$0xff]  ;;  %v226_v58 = vld [vmem:[%s2221_s22 + $0xd8] sm:$0xff]  ;;  %v207_v59 = vld [vmem:[%s2221_s22 + $0x40] sm:$0xff] }
  0x31   : > { %v463_v6 = vsel %vm342_vm0, %v352_v55, 0.0  ;;  %v525_v7 = vrot.slane %v2377_v60, 1  ;;  %v526_v8 = vrot.slane %v2380_v62, 1  ;;  %v748_v13 = vrot.slane %v2361_v37, 2 }
  0x32   : > { %2021 = vrot.lane.b32.xlu1 %v2020_v57, %s2164_s26  ;;  %v528_v12 = vrot.slane %v463_v6, 1  ;;  %v750_v14 = vrot.slane %v472_v38, 2  ;;  %v284_v15 = vadd.f32 %v2226_v5, %v246_v21  ;;  %v354_v16 = vrot.slane %v283_v26, 7 }
  0x33   : > { %v702_v17 = vrot.slane %v2377_v60, 2  ;;  %v703_v19 = vrot.slane %v2380_v62, 2  ;;  %v527_v20 = vsel %vm509_vm2, %v525_v7, %v526_v8  ;;  %v749_v23 = vsel %vm686_vm1, %v747_v56, %v748_v13 }
  0x34   : > { %2026 = vrot.lane.b32.xlu0 %v2025_v61, %s2163_s25  ;;  %v529_v22 = vsel %vm509_vm2, %v526_v8, %v528_v12  ;;  %v751_v25 = vsel %vm686_vm1, %v748_v13, %v750_v14  ;;  %v355_v26 = vrot.slane %v284_v15, 7  ;;  %v2398_v34 = vsel %vm342_vm0, 0.0, %v354_v16  ;;  %v208_v12 = vld [vmem:[%s2221_s22 + $0x48] sm:$0xff] }
  0x35   : > { %v2030_v33 = vpack.i.bf16 %v529_v22, %v527_v20  ;;  %v2035_v21 = vpack.i.bf16 %v751_v25, %v749_v23  ;;  %v530_v35 = vrot.slane %v2398_v34, 1  ;;  %v704_v38 = vsel %vm686_vm1, %v702_v17, %v703_v19 }
  0x36   : > { %v705_v39 = vrot.slane %v463_v6, 2  ;;  %v707_v40 = vrot.slane %v2398_v34, 2  ;;  %v2405_v43 = vsel %vm342_vm0, %v354_v16, %v355_v26  ;;  %v464_v45 = vsel %vm342_vm0, %v355_v26, 0.0 }
  0x37   : > { %2031 = vrot.lane.b32.xlu1 %v2030_v33, %s2164_s26  ;;  %v263_v46 = vmul.f32 %v2206_v2, %v223_v31  ;;  %v264_v47 = vmul.f32 %v2206_v2, %v224_v32  ;;  %v531_v49 = vrot.slane %v2405_v43, 1  ;;  %v533_v50 = vrot.slane %v464_v45, 1 }
  0x38   : > { %2036 = vrot.lane.b32.xlu0 %v2035_v21, %s2163_s25  ;;  %v706_v52 = vsel %vm686_vm1, %v703_v19, %v705_v39  ;;  %v708_v53 = vrot.slane %v2405_v43, 2  ;;  %v710_v55 = vrot.slane %v464_v45, 2  ;;  %v265_v8 = vmul.f32 %v2206_v2, %v225_v48 }
  0x39   : > { %v2045_v54 = vpack.i.bf16 %v706_v52, %v704_v38  ;;  %v301_v56 = vadd.f32 %v2226_v5, %v263_v46  ;;  %v302_v57 = vadd.f32 %v2226_v5, %v264_v47  ;;  %v532_v61 = vsel %vm509_vm2, %v530_v35, %v531_v49 }
  0x3a   : > { %v534_v6 = vsel %vm509_vm2, %v531_v49, %v533_v50  ;;  %v709_v7 = vsel %vm686_vm1, %v707_v40, %v708_v53  ;;  %v711_v14 = vsel %vm686_vm1, %v708_v53, %v710_v55  ;;  %v266_v19 = vmul.f32 %v2206_v2, %v226_v58  ;;  %v209_v55 = vld [vmem:[%s2221_s22 + $0x50] sm:$0xff] }
  0x3b   : > { %v2040_v13 = vpack.i.bf16 %v534_v6, %v532_v61  ;;  %v381_v15 = vrot.slane %v301_v56, 7  ;;  %v382_v16 = vrot.slane %v302_v57, 7  ;;  %v2050_v17 = vpack.i.bf16 %v711_v14, %v709_v7 }
  0x3c   : > { %2046 = vrot.lane.b32.xlu0 %v2045_v54, %s2163_s25  ;;  %v303_v20 = vadd.f32 %v2226_v5, %v265_v8  ;;  %v247_v22 = vmul.f32 %v2206_v2, %v207_v59  ;;  %v248_v32 = vmul.f32 %v2206_v2, %v208_v12  ;;  %v304_v35 = vadd.f32 %v2226_v5, %v266_v19 }
  0x3d   : > { %2041 = vrot.lane.b32.xlu1 %v2040_v13, %s2164_s26  ;;  %v2431_v23 = vsel %vm342_vm0, %v381_v15, %v382_v16  ;;  %v2434_v25 = vsel %vm342_vm0, 0.0, %v381_v15  ;;  %v473_v31 = vsel %vm342_vm0, %v382_v16, 0.0  ;;  %v210_v15 = vld [vmem:[%s2221_s22 + $0x58] sm:$0xff]  ;;  %v249_v16 = vmul.f32 %v2206_v2, %v209_v55 }
  0x3e   : > { %v575_v33 = vrot.slane %v2434_v25, 1  ;;  %v576_v21 = vrot.slane %v2431_v23, 1  ;;  %v578_v26 = vrot.slane %v473_v31, 1  ;;  %v384_v38 = vrot.slane %v303_v20, 7 }
  0x3f   : > { %v752_v39 = vrot.slane %v2434_v25, 2  ;;  %v753_v40 = vrot.slane %v2431_v23, 2  ;;  %v755_v45 = vrot.slane %v473_v31, 2  ;;  %v385_v48 = vrot.slane %v304_v35, 7 }
  0x40   : > { %v577_v46 = vsel %vm509_vm2, %v575_v33, %v576_v21  ;;  %v579_v47 = vsel %vm509_vm2, %v576_v21, %v578_v26  ;;  %v285_v49 = vadd.f32 %v2226_v5, %v247_v22  ;;  %v2448_v52 = vsel %vm342_vm0, 0.0, %v384_v38  ;;  %v227_v26 = vld [vmem:[%s2221_s22 + $0xe0] sm:$0xff] }
  0x41   : > { %2051 = vrot.lane.b32.xlu1 %v2050_v17, %s2163_s25  ;;  %v2055_v50 = vpack.i.bf16 %v579_v47, %v577_v46  ;;  %v754_v53 = vsel %vm686_vm1, %v752_v39, %v753_v40  ;;  %v756_v54 = vsel %vm686_vm1, %v753_v40, %v755_v45  ;;  %v2454_v56 = vsel %vm342_vm0, %v384_v38, %v385_v48  ;;  %v228_v45 = vld [vmem:[%s2221_s22 + $0xe8] sm:$0xff] }
  0x42   : > { %v474_v57 = vsel %vm342_vm0, %v385_v48, 0.0  ;;  %v580_v58 = vrot.slane %v2448_v52, 1  ;;  %v2065_v59 = vpack.i.bf16 %v756_v54, %v754_v53  ;;  %v581_v61 = vrot.slane %v2454_v56, 1 }
  0x43   : > { %2056 = vrot.lane.b32.xlu0 %v2055_v50, %s2164_s26  ;;  %v583_v6 = vrot.slane %v474_v57, 1  ;;  %v286_v7 = vadd.f32 %v2226_v5, %v248_v32  ;;  %v357_v8 = vrot.slane %v285_v49, 7  ;;  %v757_v12 = vrot.slane %v2448_v52, 2 }
  0x44   : > { %v758_v13 = vrot.slane %v2454_v56, 2  ;;  %v760_v14 = vrot.slane %v474_v57, 2  ;;  %v582_v17 = vsel %vm509_vm2, %v580_v58, %v581_v61  ;;  %v250_v40 = vmul.f32 %v2206_v2, %v210_v15 }
  0x45   : > { %v584_v19 = vsel %vm509_vm2, %v581_v61, %v583_v6  ;;  %v358_v20 = vrot.slane %v286_v7, 7  ;;  %v2468_v22 = vsel %vm342_vm0, 0.0, %v357_v8  ;;  %v287_v48 = vadd.f32 %v2226_v5, %v249_v16 }
  0x46   : > { %v2060_v31 = vpack.i.bf16 %v584_v19, %v582_v17  ;;  %v535_v32 = vrot.slane %v2468_v22, 1  ;;  %v759_v33 = vsel %vm686_vm1, %v757_v12, %v758_v13  ;;  %v761_v21 = vsel %vm686_vm1, %v758_v13, %v760_v14  ;;  %v229_v17 = vld [vmem:[%s2221_s22 + $0xf0] sm:$0xff]  ;;  %v230_v19 = vld [vmem:[%s2221_s22 + $0xf8] sm:$0xff] }
  0x47   : > { %2066 = vrot.lane.b32.xlu0 %v2065_v59, %s2163_s25  ;;  %v2476_v35 = vsel %vm342_vm0, %v357_v8, %v358_v20  ;;  %v465_v38 = vsel %vm342_vm0, %v358_v20, 0.0  ;;  %v2075_v39 = vpack.i.bf16 %v761_v21, %v759_v33  ;;  %v712_v49 = vrot.slane %v2468_v22, 2 }
  0x48   : > { %2061 = vrot.lane.b32.xlu1 %v2060_v31, %s2164_s26  ;;  %v536_v46 = vrot.slane %v2476_v35, 1  ;;  %v538_v47 = vrot.slane %v465_v38, 1  ;;  %v288_v50 = vadd.f32 %v2226_v5, %v250_v40  ;;  %v713_v53 = vrot.slane %v2476_v35, 2 }
  0x49   : > { %v715_v54 = vrot.slane %v465_v38, 2  ;;  %v267_v55 = vmul.f32 %v2206_v2, %v227_v26  ;;  %v360_v59 = vrot.slane %v287_v48, 7  ;;  %v268_v61 = vmul.f32 %v2206_v2, %v228_v45 }
  0x4a   : > { %v537_v57 = vsel %vm509_vm2, %v535_v32, %v536_v46  ;;  %v539_v58 = vsel %vm509_vm2, %v536_v46, %v538_v47  ;;  %v361_v7 = vrot.slane %v288_v50, 7  ;;  %v714_v8 = vsel %vm686_vm1, %v712_v49, %v713_v53 }
  0x4b   : > { %v2070_v6 = vpack.i.bf16 %v539_v58, %v537_v57  ;;  %2076 = vrot.lane.b32.xlu0 %v2075_v39, %s2163_s25  ;;  %v716_v12 = vsel %vm686_vm1, %v713_v53, %v715_v54  ;;  %v2495_v13 = vsel %vm342_vm0, 0.0, %v360_v59  ;;  %v305_v15 = vadd.f32 %v2226_v5, %v267_v55 }
  0x4c   : > { %v2085_v14 = vpack.i.bf16 %v716_v12, %v714_v8  ;;  %v306_v16 = vadd.f32 %v2226_v5, %v268_v61  ;;  %v2503_v20 = vsel %vm342_vm0, %v360_v59, %v361_v7  ;;  %v466_v31 = vsel %vm342_vm0, %v361_v7, 0.0  ;;  %v211_v59 = vld [vmem:[%s2221_s22 + $0x60] sm:$0xff]  ;;  %v212_v61 = vld [vmem:[%s2221_s22 + $0x68] sm:$0xff] }
  0x4d   : > { %2071 = vrot.lane.b32.xlu1 %v2070_v6, %s2164_s26  ;;  %v540_v32 = vrot.slane %v2495_v13, 1  ;;  %v717_v33 = vrot.slane %v2495_v13, 2  ;;  %v541_v21 = vrot.slane %v2503_v20, 1  ;;  %v543_v26 = vrot.slane %v466_v31, 1 }
  0x4e   : > { %v718_v38 = vrot.slane %v2503_v20, 2  ;;  %v720_v39 = vrot.slane %v466_v31, 2  ;;  %v387_v40 = vrot.slane %v305_v15, 7  ;;  %v388_v45 = vrot.slane %v306_v16, 7 }
  0x4f   : > { %2086 = vrot.lane.b32.xlu0 %v2085_v14, %s2163_s25  ;;  %v269_v46 = vmul.f32 %v2206_v2, %v229_v17  ;;  %v270_v47 = vmul.f32 %v2206_v2, %v230_v19  ;;  %v542_v48 = vsel %vm509_vm2, %v540_v32, %v541_v21  ;;  %v544_v49 = vsel %vm509_vm2, %v541_v21, %v543_v26  ;;  %v213_v21 = vld [vmem:[%s2221_s22 + $0x70] sm:$0xff]  ;;  %v214_v26 = vld [vmem:[%s2221_s22 + $0x78] sm:$0xff] }
  0x50   : > { %v719_v50 = vsel %vm686_vm1, %v717_v33, %v718_v38  ;;  %v721_v53 = vsel %vm686_vm1, %v718_v38, %v720_v39  ;;  %v2080_v54 = vpack.i.bf16 %v544_v49, %v542_v48  ;;  %v2518_v57 = vsel %vm342_vm0, %v387_v40, %v388_v45 }
  0x51   : > { %v2090_v55 = vpack.i.bf16 %v721_v53, %v719_v50  ;;  %v2521_v58 = vsel %vm342_vm0, 0.0, %v387_v40  ;;  %v475_v6 = vsel %vm342_vm0, %v388_v45, 0.0  ;;  %v586_v8 = vrot.slane %v2518_v57, 1 }
  0x52   : > { %v585_v7 = vrot.slane %v2521_v58, 1  ;;  %v762_v12 = vrot.slane %v2521_v58, 2  ;;  %2081 = vrot.lane.b32.xlu1 %v2080_v54, %s2164_s26  ;;  %v588_v14 = vrot.slane %v475_v6, 1  ;;  %v763_v15 = vrot.slane %v2518_v57, 2 }
  0x53   : > { %v765_v16 = vrot.slane %v475_v6, 2  ;;  %v307_v17 = vadd.f32 %v2226_v5, %v269_v46  ;;  %v308_v31 = vadd.f32 %v2226_v5, %v270_v47  ;;  %v251_v32 = vmul.f32 %v2206_v2, %v211_v59 }
  0x54   : > { %v587_v19 = vsel %vm509_vm2, %v585_v7, %v586_v8  ;;  %v252_v33 = vmul.f32 %v2206_v2, %v212_v61  ;;  %v589_v38 = vsel %vm509_vm2, %v586_v8, %v588_v14  ;;  %v764_v39 = vsel %vm686_vm1, %v762_v12, %v763_v15 }
  0x55   : > { %v766_v40 = vsel %vm686_vm1, %v763_v15, %v765_v16  ;;  %v390_v45 = vrot.slane %v307_v17, 7  ;;  %v2095_v48 = vpack.i.bf16 %v589_v38, %v587_v19  ;;  %v391_v46 = vrot.slane %v308_v31, 7 }
  0x56   : > { %v2100_v49 = vpack.i.bf16 %v766_v40, %v764_v39  ;;  %v289_v50 = vadd.f32 %v2226_v5, %v251_v32  ;;  %2091 = vrot.lane.b32.xlu1 %v2090_v55, %s2163_s25  ;;  %v290_v53 = vadd.f32 %v2226_v5, %v252_v33  ;;  %v253_v54 = vmul.f32 %v2206_v2, %v213_v21 }
  0x57   : > { %v2544_v47 = vsel %vm342_vm0, 0.0, %v390_v45  ;;  %v254_v59 = vmul.f32 %v2206_v2, %v214_v26  ;;  %2096 = vrot.lane.b32.xlu0 %v2095_v48, %s2164_s26  ;;  %v2551_v61 = vsel %vm342_vm0, %v390_v45, %v391_v46  ;;  %v476_v6 = vsel %vm342_vm0, %v391_v46, 0.0 }
  0x58   : > { %v952_v7 = vrot.slane %v2544_v47, 1  ;;  %v363_v8 = vrot.slane %v289_v50, 7  ;;  %v953_v55 = vrot.slane %v2551_v61, 1  ;;  %v955_v12 = vrot.slane %v476_v6, 1 }
  0x59   : > { %v364_v14 = vrot.slane %v290_v53, 7  ;;  %v963_v15 = vrot.slane %v2544_v47, 2  ;;  %v964_v2 = vrot.slane %v2551_v61, 2  ;;  %v966_v17 = vrot.slane %v476_v6, 2 }
  0x5a   : > { %v2558_v16 = vsel %vm342_vm0, 0.0, %v363_v8  ;;  %v291_v19 = vadd.f32 %v2226_v5, %v253_v54  ;;  %2101 = vrot.lane.b32.xlu1 %v2100_v49, %s2163_s25  ;;  %v954_v31 = vsel %vm509_vm2, %v952_v7, %v953_v55  ;;  %v956_v32 = vsel %vm509_vm2, %v953_v55, %v955_v12 }
  0x5b   : > { %v2566_v33 = vsel %vm342_vm0, %v363_v8, %v364_v14  ;;  %v467_v21 = vsel %vm342_vm0, %v364_v14, 0.0  ;;  %v2105_v26 = vpack.i.bf16 %v956_v32, %v954_v31  ;;  %v545_v38 = vrot.slane %v2558_v16, 1 }
  0x5c   : > { %v546_v39 = vrot.slane %v2566_v33, 1  ;;  %v548_v40 = vrot.slane %v467_v21, 1  ;;  %v965_v45 = vsel %vm686_vm1, %v963_v15, %v964_v2  ;;  %v967_v48 = vsel %vm686_vm1, %v964_v2, %v966_v17  ;;  %v2145_v15 = vld [vmem:[%s3011_s3 + $0x24] ss:$0 sps:$4 sm:$0x33]  }
  0x5d   : > { %v292_v49 = vadd.f32 %v2226_v5, %v254_v59  ;;  %v366_v46 = vrot.slane %v291_v19, 7  ;;  %2106 = vrot.lane.b32.xlu0 %v2105_v26, %s2164_s26  ;;  %v2115_v54 = vpack.i.bf16 %v967_v48, %v965_v45  ;;  %v722_v6 = vrot.slane %v2558_v16, 2  ;;  %1961 = vmatprep.subr.msk.bf16.mxu1 %vm1049_vm3, %v2145_v15 }
  0x5e   : > { %v547_v50 = vsel %vm509_vm2, %v545_v38, %v546_v39  ;;  %v549_v53 = vsel %vm509_vm2, %v546_v39, %v548_v40  ;;  %v723_v12 = vrot.slane %v2566_v33, 2  ;;  %v725_v5 = vrot.slane %v467_v21, 2  ;;  %1960 = vmatprep.subr.msk.bf16.mxu0 %vm1049_vm3, %v2145_v15 }
  0x5f   : > { %v2110_v7 = vpack.i.bf16 %v549_v53, %v547_v50  ;;  %v367_v8 = vrot.slane %v292_v49, 7  ;;  %v2579_v55 = vsel %vm342_vm0, 0.0, %v366_v46  ;;  %v512_v31 = vsel %vm509_vm2, %v510_v9, %v511_v10  ;;  %v2146_v9 = vld [vmem:[%s3011_s3 + $0x1c] sm:$0xff]  }
  0x60   : > { %v550_v14 = vrot.slane %v2579_v55, 1  ;;  %v727_v59 = vrot.slane %v2579_v55, 2  ;;  %v724_v19 = vsel %vm686_vm1, %v722_v6, %v723_v12  ;;  %v726_v26 = vsel %vm686_vm1, %v723_v12, %v725_v5 }
  0x61   : > { %2111 = vrot.lane.b32.xlu1 %v2110_v7, %s2164_s26  ;;  %v2589_v2 = vsel %vm342_vm0, %v366_v46, %v367_v8  ;;  %v468_v17 = vsel %vm342_vm0, %v367_v8, 0.0  ;;  %2116 = vrot.lane.b32.xlu0 %v2115_v54, %s2163_s25  ;;  %v2125_v39 = vpack.i.bf16 %v726_v26, %v724_v19  ;;  %v514_v45 = vsel %vm509_vm2, %v511_v10, %v513_v18 }
  0x62   : > { %v551_v32 = vrot.slane %v2589_v2, 1  ;;  %v553_v21 = vrot.slane %v468_v17, 1  ;;  %v728_v38 = vrot.slane %v2589_v2, 2  ;;  %v730_v40 = vrot.slane %v468_v17, 2 }
  0x63   : > { %v690_v50 = vrot.slane %v2214_v4, 2  ;;  %v1051_v10 = vsel %vm1049_vm3, %v2145_v15, 0  ;;  %v2135_v18 = vpack.i.bf16 %v514_v45, %v512_v31  ;;  %v2147_v4 = vld [vmem:[%s3011_s3 + $0x14] sm:$0xff]   ;;  %v689_v7 = vsel %vm686_vm1, %v687_v24, %v688_v11 }
  0x64   : > { %v552_v48 = vsel %vm509_vm2, %v550_v14, %v551_v32  ;;  %v554_v49 = vsel %vm509_vm2, %v551_v32, %v553_v21  ;;  %v729_v46 = vsel %vm686_vm1, %v727_v59, %v728_v38  ;;  %v731_v54 = vsel %vm686_vm1, %v728_v38, %v730_v40  ;;  %1957 = vmatpush3.bf16.msra.mxu1 %v1051_v10  ;;  %v2148_v14 = vld [vmem:[%s3011_s3 + $0x10] ss:$0 sps:$4 sm:$0x33]   ;;  %v2149_v24 = vld [vmem:[%s3011_s3 + $0x38] ss:$0 sps:$4 sm:$0x33]  }
  0x65   : > { %v2120_v53 = vpack.i.bf16 %v554_v49, %v552_v48  ;;  %2126 = vrot.lane.b32.xlu0 %v2125_v39, %s2163_s25  ;;  %v2130_v6 = vpack.i.bf16 %v731_v54, %v729_v46  ;;  %1955 = vmatprep.subr.bf16.mxu1 %v2146_v9  ;;  %v691_v8 = vsel %vm686_vm1, %v688_v11, %v690_v50 }
  0x66   : > { %1841 = vmatpush3.bf16.msra.mxu0 %v1051_v10  ;;  %v2140_v12 = vpack.i.bf16 %v691_v8, %v689_v7 }
  0x67   : > { %2121 = vrot.lane.b32.xlu1 %v2120_v53, %s2164_s26  ;;  %1842 = vmatprep.subr.bf16.mxu0 %v2146_v9 }
  0x68   : > { %1958 = vmatpush3.bf16.msra.mxu1 %v2146_v9 }
  0x69   : > { %2136 = vrot.lane.b32.xlu0 %v2135_v18, %s2164_s26  ;;  %1956 = vmatprep.subr.bf16.mxu1 %v2147_v4 }
  0x6a   : > { %1843 = vmatpush3.bf16.msra.mxu0 %v2146_v9 }
  0x6b   : > { %2131 = vrot.lane.b32.xlu1 %v2130_v6, %s2163_s25  ;;  %1844 = vmatprep.subr.bf16.mxu0 %v2147_v4 }
  0x6c   : > { %1959 = vmatpush3.bf16.msra.mxu1 %v2147_v4 }
  0x6d   : > { %1962 = vmatprep.subr.msk.bf16.mxu1 %vm1049_vm3, %v2148_v14 }
  0x6e   : > { %1845 = vmatpush3.bf16.msra.mxu0 %v2147_v4 }
  0x6f   : > { %2141 = vrot.lane.b32.xlu1 %v2140_v12, %s2163_s25  ;;  %1963 = vmatprep.subr.msk.bf16.mxu0 %vm1049_vm3, %v2149_v24  ;;  %v1233_v12 = vsel %vm1049_vm3, %v2148_v14, 0 }
  0x8e   : > { %v1987_v11 = vpop.permute.xlu1 %1986  ;;  %v1977_v15 = vpop.permute.xlu0 %1976 }
  0x8f   : > { %v1989_v5 = vunpack.i.h.bf16 %v1987_v11  ;;  %v1988_v59 = vunpack.i.l.bf16 %v1987_v11  ;;  %v1979_v17 = vunpack.i.h.bf16 %v1977_v15  ;;  %v1978_v19 = vunpack.i.l.bf16 %v1977_v15 }
  0x91   : > { %v883_v31 = vsel %vm863_vm4, %v2258_v41, %v1979_v17  ;;  %v882_v32 = vsel %vm863_vm4, %v2261_v42, %v1978_v19 }
  0x92   : > { %v1982_v21 = vpop.permute.xlu0 %1981  ;;  %v915_v26 = vsel %vm896_vm5, %v882_v32, %v1988_v59  ;;  %v916_v38 = vsel %vm896_vm5, %v883_v31, %v1989_v5 }
  0x93   : > { %v1992_v39 = vpop.permute.xlu1 %1991  ;;  %v2648_v40 = vpack.c.bf16 %v916_v38, %v915_v26  ;;  %v1984_v45 = vunpack.i.h.bf16 %v1982_v21  ;;  %v1983_v9 = vunpack.i.l.bf16 %v1982_v21 }
  0x94   : > { %v1994_v50 = vunpack.i.h.bf16 %v1992_v39  ;;  %v1993_v53 = vunpack.i.l.bf16 %v1992_v39 }
  0x95   : > { %1862 = vmatprep.mubr.msk.bf16.mxu1 %vm1000_vm6, %v2648_v40  ;;  %v885_v42 = vsel %vm863_vm4, %v2272_v51, %v1984_v45  ;;  %v884_v46 = vsel %vm863_vm4, %v2265_v44, %v1983_v9  ;;  %v2150_v51 = vld [vmem:[%s3011_s3 + $0x8] sm:$0xff]  }
  0x96   : > { %v1997_v48 = vpop.permute.xlu0 %1996  ;;  %v866_v59 = vsel %vm863_vm4, %v2286_v0, %v1993_v53  ;;  %v867_v15 = vsel %vm863_vm4, %v2283_v63, %v1994_v50  ;;  %v2152_v63 = vld [vmem:[%s3011_s3] sm:$0xff]  }
  0x97   : > { %v1999_v49 = vunpack.i.h.bf16 %v1997_v48  ;;  %v1998_v41 = vunpack.i.l.bf16 %v1997_v48 }
  0x98   : > { %v2002_v54 = vpop.permute.xlu1 %2001 }
  0x99   : > { %v917_v10 = vsel %vm896_vm5, %v884_v46, %v1998_v41  ;;  %v918_v18 = vsel %vm896_vm5, %v885_v42, %v1999_v49  ;;  %v2004_v4 = vunpack.i.h.bf16 %v2002_v54  ;;  %v2003_v7 = vunpack.i.l.bf16 %v2002_v54  ;;  %v2153_v41 = vld [vmem:[%s3011_s3 + $0x28] sm:$0xff]  }
  0x9a   : > { %v2658_v6 = vpack.c.bf16 %v918_v18, %v917_v10  ;;  %v2007_v8 = vpop.permute.xlu0 %2006 }
  0x9b   : > { %v2009_v11 = vunpack.i.h.bf16 %v2007_v8  ;;  %v2008_v44 = vunpack.i.l.bf16 %v2007_v8  ;;  %v869_v32 = vsel %vm863_vm4, %v2303_v29, %v2004_v4  ;;  %v868_v21 = vsel %vm863_vm4, %v2306_v30, %v2003_v7  ;;  %v2151_v30 = vld [vmem:[%s3011_s3 + $0x30] sm:$0xff]  }
  0x9c   : > { %v2012_v5 = vpop.permute.xlu1 %2011  ;;  %1863 = vmatmul.mubr.msk.bf16.vlgmr.msra.gmra.mxu1 %vm1000_vm6, %v2658_v6  ;;  %v1418_v29 = vsel %vm1049_vm3, %v2149_v24, 0 }
  0x9d   : > { %v2014_v17 = vunpack.i.h.bf16 %v2012_v5  ;;  %v2013_v19 = vunpack.i.l.bf16 %v2012_v5  ;;  %v899_v14 = vsel %vm896_vm5, %v866_v59, %v2008_v44  ;;  %v900_v31 = vsel %vm896_vm5, %v867_v15, %v2009_v11  ;;  %1879 = vmatpush3.bf16.msra.mxu1 %v1233_v12 }
  0x9e   : > { %v2676_v26 = vpack.c.bf16 %v900_v31, %v899_v14  ;;  %1880 = vmatprep.subr.bf16.mxu1 %v2150_v51 }
  0x9f   : > { %v901_v0 = vsel %vm896_vm5, %v868_v21, %v2013_v19  ;;  %v902_v38 = vsel %vm896_vm5, %v869_v32, %v2014_v17 }
  0xa0   : > { %v2683_v39 = vpack.c.bf16 %v902_v38, %v901_v0  ;;  %1846 = vmatprep.mubr.msk.bf16.mxu0 %vm1000_vm6, %v2676_v26 }
  0xa1   : > { %1881 = vmatpush3.bf16.msra.mxu1 %v2150_v51 }
  0xa2   : > { %v2017_v45 = vpop.permute.xlu0 %2016  ;;  %1847 = vmatmul.mubr.msk.bf16.vlgmr.msra.gmra.mxu0 %vm1000_vm6, %v2683_v39  ;;  %1882 = vmatprep.subr.bf16.mxu1 %v2152_v63 }
  0xa3   : > { %v2019_v9 = vunpack.i.h.bf16 %v2017_v45  ;;  %v2018_v48 = vunpack.i.l.bf16 %v2017_v45  ;;  %1917 = vmatpush3.bf16.msra.mxu0 %v1418_v29 }
  0xa4   : > { %v2022_v49 = vpop.permute.xlu1 %2021  ;;  %1918 = vmatprep.subr.bf16.mxu0 %v2151_v30 }
  0xa5   : > { %1883 = vmatpush3.bf16.msra.mxu1 %v2152_v63  ;;  %v887_v50 = vsel %vm863_vm4, %v2348_v27, %v2019_v9  ;;  %v886_v53 = vsel %vm863_vm4, %v2351_v28, %v2018_v48  ;;  %v2024_v54 = vunpack.i.h.bf16 %v2022_v49  ;;  %v2023_v10 = vunpack.i.l.bf16 %v2022_v49 }
  0xa6   : > { %v2027_v24 = vpop.permute.xlu0 %2026 }
  0xa7   : > { %v2029_v42 = vunpack.i.h.bf16 %v2027_v24  ;;  %v2028_v46 = vunpack.i.l.bf16 %v2027_v24  ;;  %1919 = vmatpush3.bf16.msra.mxu0 %v2151_v30  ;;  %v889_v27 = vsel %vm863_vm4, %v2361_v37, %v2024_v54  ;;  %v888_v28 = vsel %vm863_vm4, %v2358_v36, %v2023_v10 }
  0xa8   : > { %1920 = vmatprep.subr.bf16.mxu0 %v2153_v41 }
  0xa9   : > { %v919_v18 = vsel %vm896_vm5, %v886_v53, %v2028_v46  ;;  %v920_v4 = vsel %vm896_vm5, %v887_v50, %v2029_v42  ;;  %v2032_v7 = vpop.permute.xlu1 %2031 }
  0xaa   : > { %v2702_v8 = vpack.c.bf16 %v920_v4, %v919_v18  ;;  %v2037_v12 = vpop.permute.xlu0 %2036  ;;  %v2034_v44 = vunpack.i.h.bf16 %v2032_v7  ;;  %v2033_v5 = vunpack.i.l.bf16 %v2032_v7 }
  0xab   : > { %v2039_v51 = vunpack.i.h.bf16 %v2037_v12  ;;  %v2038_v11 = vunpack.i.l.bf16 %v2037_v12  ;;  %1921 = vmatpush3.bf16.msra.mxu0 %v2153_v41 }
  0xac   : > { %1866 = vmatprep.mubr.msk.bf16.mxu1 %vm1000_vm6, %v2702_v8  ;;  %v871_v37 = vsel %vm863_vm4, %v2380_v62, %v2034_v44  ;;  %v870_v36 = vsel %vm863_vm4, %v2377_v60, %v2033_v5 }
  0xad   : > { %v921_v59 = vsel %vm896_vm5, %v888_v28, %v2038_v11  ;;  %v922_v15 = vsel %vm896_vm5, %v889_v27, %v2039_v51 }
  0xae   : > { %v2712_v17 = vpack.c.bf16 %v922_v15, %v921_v59  ;;  %v2047_v19 = vpop.permute.xlu0 %2046 }
  0xaf   : > { %v2042_v14 = vpop.permute.xlu1 %2041  ;;  %v2049_v31 = vunpack.i.h.bf16 %v2047_v19  ;;  %v2048_v32 = vunpack.i.l.bf16 %v2047_v19 }
  0xb0   : > { %1867 = vmatmul.mubr.msk.bf16.gmra.mxu1 %vm1000_vm6, %v2712_v17  ;;  %v2044_v21 = vunpack.i.h.bf16 %v2042_v14  ;;  %v2043_v63 = vunpack.i.l.bf16 %v2042_v14 }
  0xb1   : > { %v903_v0 = vsel %vm896_vm5, %v870_v36, %v2048_v32  ;;  %v904_v38 = vsel %vm896_vm5, %v871_v37, %v2049_v31 }
  0xb2   : > { %v2722_v29 = vpack.c.bf16 %v904_v38, %v903_v0  ;;  %v873_v60 = vsel %vm863_vm4, %v2405_v43, %v2044_v21  ;;  %v872_v62 = vsel %vm863_vm4, %v2398_v34, %v2043_v63 }
  0xb3   : > { %v2052_v30 = vpop.permute.xlu1 %2051 }
  0xb4   : > { %v2054_v45 = vunpack.i.h.bf16 %v2052_v30  ;;  %v2053_v9 = vunpack.i.l.bf16 %v2052_v30  ;;  %1850 = vmatprep.mubr.msk.bf16.mxu0 %vm1000_vm6, %v2722_v29 }
  0xb5   : > { %v2057_v48 = vpop.permute.xlu0 %2056 }
  0xb6   : > { %v905_v49 = vsel %vm896_vm5, %v872_v62, %v2053_v9  ;;  %v906_v41 = vsel %vm896_vm5, %v873_v60, %v2054_v45  ;;  %v2059_v42 = vunpack.i.h.bf16 %v2057_v48  ;;  %v2058_v46 = vunpack.i.l.bf16 %v2057_v48 }
  0xb7   : > { %v2732_v24 = vpack.c.bf16 %v906_v41, %v905_v49 }
  0xb8   : > { %v891_v43 = vsel %vm863_vm4, %v2431_v23, %v2059_v42  ;;  %v890_v34 = vsel %vm863_vm4, %v2434_v25, %v2058_v46 }
  0xb9   : > { %1851 = vmatmul.mubr.msk.bf16.gmra.mxu0 %vm1000_vm6, %v2732_v24  ;;  %v2067_v50 = vpop.permute.xlu0 %2066 }
  0xba   : > { %v2062_v53 = vpop.permute.xlu1 %2061  ;;  %v2069_v54 = vunpack.i.h.bf16 %v2067_v50  ;;  %v2068_v10 = vunpack.i.l.bf16 %v2067_v50 }
  0xbb   : > { %v2064_v18 = vunpack.i.h.bf16 %v2062_v53  ;;  %v2063_v4 = vunpack.i.l.bf16 %v2062_v53 }
  0xbc   : > { %v923_v7 = vsel %vm896_vm5, %v890_v34, %v2068_v10  ;;  %v924_v12 = vsel %vm896_vm5, %v891_v43, %v2069_v54 }
  0xbd   : > { %v2742_v51 = vpack.c.bf16 %v924_v12, %v923_v7  ;;  %v2077_v11 = vpop.permute.xlu0 %2076  ;;  %v893_v44 = vsel %vm863_vm4, %v2454_v56, %v2064_v18  ;;  %v892_v23 = vsel %vm863_vm4, %v2448_v52, %v2063_v4 }
  0xbe   : > { %v2079_v27 = vunpack.i.h.bf16 %v2077_v11  ;;  %v2078_v28 = vunpack.i.l.bf16 %v2077_v11 }
  0xbf   : > { %v2072_v5 = vpop.permute.xlu1 %2071  ;;  %1870 = vmatprep.mubr.msk.bf16.mxu1 %vm1000_vm6, %v2742_v51 }
  0xc0   : > { %v2074_v25 = vunpack.i.h.bf16 %v2072_v5  ;;  %v2073_v59 = vunpack.i.l.bf16 %v2072_v5  ;;  %v925_v15 = vsel %vm896_vm5, %v892_v23, %v2078_v28  ;;  %v926_v19 = vsel %vm896_vm5, %v893_v44, %v2079_v27 }
  0xc1   : > { %v2752_v14 = vpack.c.bf16 %v926_v19, %v925_v15  ;;  %v2087_v31 = vpop.permute.xlu0 %2086 }
  0xc2   : > { %v2089_v32 = vunpack.i.h.bf16 %v2087_v31  ;;  %v2088_v37 = vunpack.i.l.bf16 %v2087_v31  ;;  %v875_v56 = vsel %vm863_vm4, %v2476_v35, %v2074_v25  ;;  %v874_v52 = vsel %vm863_vm4, %v2468_v22, %v2073_v59 }
  0xc3   : > { %1871 = vmatmul.mubr.msk.bf16.gmra.mxu1 %vm1000_vm6, %v2752_v14 }
  0xc4   : > { %v907_v36 = vsel %vm896_vm5, %v874_v52, %v2088_v37  ;;  %v908_v21 = vsel %vm896_vm5, %v875_v56, %v2089_v32  ;;  %v2082_v63 = vpop.permute.xlu1 %2081 }
  0xc5   : > { %v2762_v0 = vpack.c.bf16 %v908_v21, %v907_v36  ;;  %v2084_v38 = vunpack.i.h.bf16 %v2082_v63  ;;  %v2083_v30 = vunpack.i.l.bf16 %v2082_v63 }
  0xc7   : > { %1854 = vmatprep.mubr.msk.bf16.mxu0 %vm1000_vm6, %v2762_v0  ;;  %v877_v22 = vsel %vm863_vm4, %v2503_v20, %v2084_v38  ;;  %v876_v62 = vsel %vm863_vm4, %v2495_v13, %v2083_v30 }
  0xc8   : > { %v2092_v45 = vpop.permute.xlu1 %2091 }
  0xc9   : > { %v2094_v35 = vunpack.i.h.bf16 %v2092_v45  ;;  %v2093_v9 = vunpack.i.l.bf16 %v2092_v45  ;;  %v2097_v60 = vpop.permute.xlu0 %2096 }
  0xca   : > { %v2099_v48 = vunpack.i.h.bf16 %v2097_v60  ;;  %v2098_v49 = vunpack.i.l.bf16 %v2097_v60 }
  0xcb   : > { %v909_v41 = vsel %vm896_vm5, %v876_v62, %v2093_v9  ;;  %v910_v42 = vsel %vm896_vm5, %v877_v22, %v2094_v35 }
  0xcc   : > { %v2772_v46 = vpack.c.bf16 %v910_v42, %v909_v41  ;;  %v895_v50 = vsel %vm863_vm4, %v2518_v57, %v2099_v48  ;;  %v894_v53 = vsel %vm863_vm4, %v2521_v58, %v2098_v49  ;;  %v2102_v54 = vpop.permute.xlu1 %2101 }
  0xcd   : > { %v2104_v10 = vunpack.i.h.bf16 %v2102_v54  ;;  %v2103_v20 = vunpack.i.l.bf16 %v2102_v54 }
  0xce   : > { %1855 = vmatmul.mubr.msk.bf16.gmra.mxu0 %vm1000_vm6, %v2772_v46 }
  0xcf   : > { %v928_v13 = vsel %vm896_vm5, %v895_v50, %v2104_v10  ;;  %v927_v43 = vsel %vm896_vm5, %v894_v53, %v2103_v20  ;;  %v2107_v34 = vpop.permute.xlu0 %2106 }
  0xd0   : > { %v2782_v18 = vpack.c.bf16 %v928_v13, %v927_v43  ;;  %v2109_v4 = vunpack.i.h.bf16 %v2107_v34  ;;  %v2108_v7 = vunpack.i.l.bf16 %v2107_v34 }
  0xd2   : > { %1874 = vmatprep.mubr.msk.bf16.mxu1 %vm1000_vm6, %v2782_v18  ;;  %v975_v27 = vsel %vm863_vm4, %v2551_v61, %v2109_v4  ;;  %v974_v28 = vsel %vm863_vm4, %v2544_v47, %v2108_v7 }
  0xd3   : > { %v2112_v12 = vpop.permute.xlu1 %2111  ;;  %v2117_v57 = vpop.permute.xlu0 %2116 }
  0xd4   : > { %v2119_v58 = vunpack.i.h.bf16 %v2117_v57  ;;  %v2118_v11 = vunpack.i.l.bf16 %v2117_v57  ;;  %v2114_v44 = vunpack.i.h.bf16 %v2112_v12  ;;  %v2113_v23 = vunpack.i.l.bf16 %v2112_v12 }
  0xd6   : > { %v976_v5 = vsel %vm896_vm5, %v974_v28, %v2118_v11  ;;  %v977_v25 = vsel %vm896_vm5, %v975_v27, %v2119_v58  ;;  %v879_v37 = vsel %vm863_vm4, %v2566_v33, %v2114_v44  ;;  %v878_v61 = vsel %vm863_vm4, %v2558_v16, %v2113_v23 }
  0xd7   : > { %v2792_v59 = vpack.c.bf16 %v977_v25, %v976_v5  ;;  %v2127_v15 = vpop.permute.xlu0 %2126 }
  0xd8   : > { %v2129_v31 = vunpack.i.h.bf16 %v2127_v15  ;;  %v2128_v32 = vunpack.i.l.bf16 %v2127_v15 }
  0xd9   : > { %v2122_v19 = vpop.permute.xlu1 %2121  ;;  %1875 = vmatmul.mubr.msk.bf16.gmra.mxu1 %vm1000_vm6, %v2792_v59 }
  0xda   : > { %v2124_v47 = vunpack.i.h.bf16 %v2122_v19  ;;  %v2123_v56 = vunpack.i.l.bf16 %v2122_v19  ;;  %v911_v52 = vsel %vm896_vm5, %v878_v61, %v2128_v32  ;;  %v912_v36 = vsel %vm896_vm5, %v879_v37, %v2129_v31 }
  0xdb   : > { %v936_v21 = vpack.c.bf16 %v912_v36, %v911_v52  ;;  %v2137_v63 = vpop.permute.xlu0 %2136 }
  0xdc   : > { %v2139_v30 = vunpack.i.h.bf16 %v2137_v63  ;;  %v2138_v45 = vunpack.i.l.bf16 %v2137_v63  ;;  %v881_v16 = vsel %vm863_vm4, %v2589_v2, %v2124_v47  ;;  %v880_v33 = vsel %vm863_vm4, %v2579_v55, %v2123_v56 }
  0xdd   : > { %v2132_v38 = vpop.permute.xlu1 %2131  ;;  %1858 = vmatprep.mubr.msk.bf16.mxu0 %vm1000_vm6, %v936_v21 }
  0xde   : > { %v2134_v35 = vunpack.i.h.bf16 %v2132_v38  ;;  %v2133_v9 = vunpack.i.l.bf16 %v2132_v38  ;;  %v865_v48 = vsel %vm863_vm4, %v2200_v1, %v2139_v30  ;;  %v864_v49 = vsel %vm863_vm4, %v2210_v3, %v2138_v45 }
  0xe0   : > { %v913_v60 = vsel %vm896_vm5, %v880_v33, %v2133_v9  ;;  %v914_v22 = vsel %vm896_vm5, %v881_v16, %v2134_v35 }
  0xe1   : > { %v937_v62 = vpack.c.bf16 %v914_v22, %v913_v60  ;;  %v2142_v41 = vpop.permute.xlu1 %2141 }
  0xe2   : > { %v2144_v42 = vunpack.i.h.bf16 %v2142_v41  ;;  %v2143_v50 = vunpack.i.l.bf16 %v2142_v41 }
  0xe3   : > { %1859 = vmatmul.mubr.msk.bf16.gmra.mxu0 %vm1000_vm6, %v937_v62 }
  0xe4   : > { %v898_v2 = vsel %vm896_vm5, %v865_v48, %v2144_v42  ;;  %v897_v55 = vsel %vm896_vm5, %v864_v49, %v2143_v50  ;;  %1922 = vmatprep.mubr.msk.bf16.mxu0 %vm1000_vm6, %v2683_v39 }
  0xe5   : > { %v929_v53 = vpack.c.bf16 %v898_v2, %v897_v55 }
  0xe7   : > { %1884 = vmatprep.mubr.msk.bf16.mxu1 %vm1000_vm6, %v929_v53 }
  0xe8   : > { %1885 = vmatmul.mubr.msk.bf16.vlgmr.msra.gmra.mxu1 %vm1000_vm6, %v2676_v26 }
  0xe9   : > { %1888 = vmatprep.mubr.msk.bf16.mxu1 %vm1000_vm6, %v2683_v39 }
  0xeb   : > { %1923 = vmatmul.mubr.msk.bf16.vlgmr.msra.gmra.mxu0 %vm1000_vm6, %v2722_v29 }
  0xec   : > { %1926 = vmatprep.mubr.msk.bf16.mxu0 %vm1000_vm6, %v2732_v24 }
  0xf0   : > { %1889 = vmatmul.mubr.msk.bf16.gmra.mxu1 %vm1000_vm6, %v2722_v29 }
  0xf1   : > { %1892 = vmatprep.mubr.msk.bf16.mxu1 %vm1000_vm6, %v2732_v24 }
  0xf3   : > { %1927 = vmatmul.mubr.msk.bf16.gmra.mxu0 %vm1000_vm6, %v2762_v0 }
  0xf4   : > { %1930 = vmatprep.mubr.msk.bf16.mxu0 %vm1000_vm6, %v2772_v46 }
  0xf8   : > { %1893 = vmatmul.mubr.msk.bf16.gmra.mxu1 %vm1000_vm6, %v2762_v0 }
  0xf9   : > { %1896 = vmatprep.mubr.msk.bf16.mxu1 %vm1000_vm6, %v2772_v46 }
  0xfb   : > { %1931 = vmatmul.mubr.msk.bf16.gmra.mxu0 %vm1000_vm6, %v936_v21 }
  0xfc   : > { %1934 = vmatprep.mubr.msk.bf16.mxu0 %vm1000_vm6, %v937_v62 }
 0x100   : > { %1897 = vmatmul.mubr.msk.bf16.gmra.mxu1 %vm1000_vm6, %v936_v21 }
 0x101   : > { %1900 = vmatprep.mubr.msk.bf16.mxu1 %vm1000_vm6, %v937_v62 }
 0x103   : > { %1935 = vmatmul.mubr.msk.bf16.gmra.mxu0 %vm1000_vm6, %v2648_v40 }
 0x104   : > { %1938 = vmatprep.mubr.msk.bf16.mxu0 %vm1000_vm6, %v2658_v6 }
 0x108   : > { %1901 = vmatmul.mubr.msk.bf16.gmra.mxu1 %vm1000_vm6, %v2648_v40 }
 0x109   : > { %1904 = vmatprep.mubr.msk.bf16.mxu1 %vm1000_vm6, %v2658_v6 }
 0x10b   : > { %1939 = vmatmul.mubr.msk.bf16.gmra.mxu0 %vm1000_vm6, %v2702_v8 }
 0x10c   : > { %1942 = vmatprep.mubr.msk.bf16.mxu0 %vm1000_vm6, %v2712_v17 }
 0x110   : > { %1905 = vmatmul.mubr.msk.bf16.gmra.mxu1 %vm1000_vm6, %v2702_v8 }
 0x111   : > { %1908 = vmatprep.mubr.msk.bf16.mxu1 %vm1000_vm6, %v2712_v17 }
 0x113   : > { %1943 = vmatmul.mubr.msk.bf16.gmra.mxu0 %vm1000_vm6, %v2742_v51 }
 0x114   : > { %1946 = vmatprep.mubr.msk.bf16.mxu0 %vm1000_vm6, %v2752_v14 }
 0x118   : > { %1909 = vmatmul.mubr.msk.bf16.gmra.mxu1 %vm1000_vm6, %v2742_v51 }
 0x119   : > { %1912 = vmatprep.mubr.msk.bf16.mxu1 %vm1000_vm6, %v2752_v14 }
 0x11b   : > { %1947 = vmatmul.mubr.msk.bf16.gmra.mxu0 %vm1000_vm6, %v2782_v18 }
 0x11c   : > { %1950 = vmatprep.mubr.msk.bf16.mxu0 %vm1000_vm6, %v2792_v59 }
 0x120   : > { %1913 = vmatmul.mubr.msk.bf16.gmra.mxu1 %vm1000_vm6, %v2782_v18 }
 0x123   : > { %1951 = vmatmul.mubr.msk.bf16.gmra.mxu0 %vm1000_vm6, %v929_v53 }
 0x15c   : > { %v2874_v1 = vpop.f32.mrf.mxu1 }
 0x15e   : > { %v2876_v3 = vpop.f32.mrf.mxu1 }
 0x160   : > { %v2878_v40 = vpop.f32.mrf.mxu1 }
 0x162   : > { %v1848_v6 = vpop.f32.mrf.mxu0  ;;  %v2880_v26 = vpop.f32.mrf.mxu1 }
 0x164   : > { %v1087_v39 = vpop.f32.mrf.mxu0 }
 0x166   : > { %v1849_v17 = vpop.f32.mrf.mxu0 }
 0x168   : > { %v1090_v24 = vpop.f32.mrf.mxu0 }
 0x170   : > { %v2882_v8 = vpop.f32.mrf.mxu1 }
 0x172   : > { %v2884_v29 = vpop.f32.mrf.mxu1 }
 0x174   : > { %v2886_v51 = vpop.f32.mrf.mxu1 }
 0x176   : > { %v2888_v0 = vpop.f32.mrf.mxu1 }
 0x179   : > { %v1852_v14 = vpop.f32.mrf.mxu0 }
 0x17b   : > { %v1103_v46 = vpop.f32.mrf.mxu0 }
 0x17d   : > { %v1853_v10 = vpop.f32.mrf.mxu0 }
 0x17f   : > { %v1106_v13 = vpop.f32.mrf.mxu0 }
 0x183   : > { %v2890_v54 = vpop.f32.mrf.mxu1 }
 0x185   : > { %v2892_v20 = vpop.f32.mrf.mxu1 }
 0x187   : > { %v2894_v43 = vpop.f32.mrf.mxu1 }
 0x189   : > { %v2896_v18 = vpop.f32.mrf.mxu1 }
 0x18e   : > { %v1856_v34 = vpop.f32.mrf.mxu0 }
 0x190   : > { %v1119_v4 = vpop.f32.mrf.mxu0 }
 0x192   : > { %v1857_v12 = vpop.f32.mrf.mxu0 }
 0x194   : > { %v1122_v58 = vpop.f32.mrf.mxu0 }
 0x199   : > { %v2898_v7 = vpop.f32.mrf.mxu1 }
 0x19b   : > { %v2900_v57 = vpop.f32.mrf.mxu1 }
 0x19d   : > { %v2902_v11 = vpop.f32.mrf.mxu1 }
 0x19f   : > { %v2908_v44 = vpop.f32.mrf.mxu1 }
 0x1a3   : > { %v2904_v27 = vpop.f32.mrf.mxu0 }
 0x1a5   : > { %v2906_v28 = vpop.f32.mrf.mxu0 }
 0x1a7   : > { %v2910_v23 = vpop.f32.mrf.mxu0 }
 0x1a8   : > { %v1886_v5 = vpop.f32.mrf.mxu1 }
 0x1a9   : > { %v1278_v25 = vadd.f32 %v1886_v5, %v1848_v6  ;;  %v2912_v59 = vpop.f32.mrf.mxu0 }
 0x1aa   : > { %v1269_v15 = vpop.f32.mrf.mxu1 }
 0x1ab   : > { %v1270_v19 = vadd.f32 %v1269_v15, %v1087_v39  ;;  %v1924_v31 = vpop.f32.mrf.mxu0 }
 0x1ac   : > { %v1583_v32 = vadd.f32 %v1924_v31, %v1278_v25  ;;  %v1887_v37 = vpop.f32.mrf.mxu1 }
 0x1ad   : > { %v1281_v61 = vadd.f32 %v1887_v37, %v1849_v17  ;;  %v1454_v47 = vpop.f32.mrf.mxu0 }
 0x1ae   : > { %1616 = vst.msk [vmem:[%s2919_s24 + $0x10] sm:$0xff] %vm1613_vm7, %v1583_v32  ;;  %v1581_v56 = vadd.f32 %v1454_v47, %v1270_v19  ;;  %v1272_v52 = vpop.f32.mrf.mxu1 }
 0x1af   : > { %v1273_v36 = vadd.f32 %v1272_v52, %v1090_v24  ;;  %v1925_v21 = vpop.f32.mrf.mxu0 }
 0x1b0   : > { %1614 = vst.msk [vmem:[%s2919_s24] sm:$0xff] %vm1613_vm7, %v1581_v56  ;;  %v1584_v63 = vadd.f32 %v1925_v21, %v1281_v61  ;;  %v1890_v38 = vpop.f32.mrf.mxu1 }
 0x1b1   : > { %v1294_v30 = vadd.f32 %v1890_v38, %v1852_v14  ;;  %v1457_v45 = vpop.f32.mrf.mxu0 }
 0x1b2   : > { %1617 = vst.msk [vmem:[%s2919_s24 + $0x18] sm:$0xff] %vm1613_vm7, %v1584_v63  ;;  %v1582_v35 = vadd.f32 %v1457_v45, %v1273_v36  ;;  %v1285_v9 = vpop.f32.mrf.mxu1 }
 0x1b3   : > { %v1286_v16 = vadd.f32 %v1285_v9, %v1103_v46  ;;  %v1928_v33 = vpop.f32.mrf.mxu0 }
 0x1b4   : > { %1615 = vst.msk [vmem:[%s2919_s24 + $0x8] sm:$0xff] %vm1613_vm7, %v1582_v35  ;;  %v1587_v60 = vadd.f32 %v1928_v33, %v1294_v30  ;;  %v1891_v22 = vpop.f32.mrf.mxu1 }
 0x1b5   : > { %v1297_v62 = vadd.f32 %v1891_v22, %v1853_v10  ;;  %v1470_v48 = vpop.f32.mrf.mxu0 }
 0x1b6   : > { %1620 = vst.msk [vmem:[%s2919_s24 + $0x30] sm:$0xff] %vm1613_vm7, %v1587_v60  ;;  %v1585_v49 = vadd.f32 %v1470_v48, %v1286_v16  ;;  %v1288_v41 = vpop.f32.mrf.mxu1 }
 0x1b7   : > { %v1289_v42 = vadd.f32 %v1288_v41, %v1106_v13  ;;  %v1929_v50 = vpop.f32.mrf.mxu0 }
 0x1b8   : > { %1618 = vst.msk [vmem:[%s2919_s24 + $0x20] sm:$0xff] %vm1613_vm7, %v1585_v49  ;;  %v1588_v2 = vadd.f32 %v1929_v50, %v1297_v62  ;;  %v1894_v55 = vpop.f32.mrf.mxu1 }
 0x1b9   : > { %v1310_v53 = vadd.f32 %v1894_v55, %v1856_v34  ;;  %v1473_v6 = vpop.f32.mrf.mxu0 }
 0x1ba   : > { %1621 = vst.msk [vmem:[%s2919_s24 + $0x38] sm:$0xff] %vm1613_vm7, %v1588_v2  ;;  %v1586_v39 = vadd.f32 %v1473_v6, %v1289_v42  ;;  %v1301_v17 = vpop.f32.mrf.mxu1 }
 0x1bb   : > { %v1302_v24 = vadd.f32 %v1301_v17, %v1119_v4  ;;  %v1932_v14 = vpop.f32.mrf.mxu0 }
 0x1bc   : > { %1619 = vst.msk [vmem:[%s2919_s24 + $0x28] sm:$0xff] %vm1613_vm7, %v1586_v39  ;;  %v1591_v46 = vadd.f32 %v1932_v14, %v1310_v53  ;;  %v1895_v10 = vpop.f32.mrf.mxu1 }
 0x1bd   : > { %v1313_v13 = vadd.f32 %v1895_v10, %v1857_v12  ;;  %v1486_v5 = vpop.f32.mrf.mxu0 }
 0x1be   : > { %1624 = vst.msk [vmem:[%s2919_s24 + $0x50] sm:$0xff] %vm1613_vm7, %v1591_v46  ;;  %v1589_v25 = vadd.f32 %v1486_v5, %v1302_v24  ;;  %v1304_v34 = vpop.f32.mrf.mxu1 }
 0x1bf   : > { %v1305_v15 = vadd.f32 %v1304_v34, %v1122_v58  ;;  %v1933_v19 = vpop.f32.mrf.mxu0 }
 0x1c0   : > { %1622 = vst.msk [vmem:[%s2919_s24 + $0x40] sm:$0xff] %vm1613_vm7, %v1589_v25  ;;  %v1592_v31 = vadd.f32 %v1933_v19, %v1313_v13  ;;  %v1898_v4 = vpop.f32.mrf.mxu1 }
 0x1c1   : > { %v1326_v32 = vadd.f32 %v1898_v4, %v2904_v27  ;;  %v1489_v37 = vpop.f32.mrf.mxu0 }
 0x1c2   : > { %1625 = vst.msk [vmem:[%s2919_s24 + $0x58] sm:$0xff] %vm1613_vm7, %v1592_v31  ;;  %v1590_v12 = vadd.f32 %v1489_v37, %v1305_v15  ;;  %v1317_v61 = vpop.f32.mrf.mxu1 }
 0x1c3   : > { %v1318_v47 = vadd.f32 %v1317_v61, %v2906_v28  ;;  %v1936_v56 = vpop.f32.mrf.mxu0 }
 0x1c4   : > { %1623 = vst.msk [vmem:[%s2919_s24 + $0x48] sm:$0xff] %vm1613_vm7, %v1590_v12  ;;  %v1595_v58 = vadd.f32 %v1936_v56, %v1326_v32  ;;  %v1899_v52 = vpop.f32.mrf.mxu1 }
 0x1c5   : > { %v1329_v36 = vadd.f32 %v1899_v52, %v2910_v23  ;;  %v1502_v21 = vpop.f32.mrf.mxu0 }
 0x1c6   : > { %1628 = vst.msk [vmem:[%s2919_s24 + $0x70] sm:$0xff] %vm1613_vm7, %v1595_v58  ;;  %v1593_v27 = vadd.f32 %v1502_v21, %v1318_v47  ;;  %v1320_v63 = vpop.f32.mrf.mxu1 }
 0x1c7   : > { %v1321_v38 = vadd.f32 %v1320_v63, %v2912_v59  ;;  %v1937_v30 = vpop.f32.mrf.mxu0 }
 0x1c8   : > { %1626 = vst.msk [vmem:[%s2919_s24 + $0x60] sm:$0xff] %vm1613_vm7, %v1593_v27  ;;  %v1596_v28 = vadd.f32 %v1937_v30, %v1329_v36  ;;  %v1902_v45 = vpop.f32.mrf.mxu1 }
 0x1c9   : > { %v1342_v35 = vadd.f32 %v1902_v45, %v2874_v1  ;;  %v1505_v9 = vpop.f32.mrf.mxu0 }
 0x1ca   : > { %1629 = vst.msk [vmem:[%s2919_s24 + $0x78] sm:$0xff] %vm1613_vm7, %v1596_v28  ;;  %v1594_v23 = vadd.f32 %v1505_v9, %v1321_v38  ;;  %v1333_v16 = vpop.f32.mrf.mxu1 }
 0x1cb   : > { %v1334_v33 = vadd.f32 %v1333_v16, %v2876_v3  ;;  %v1940_v60 = vpop.f32.mrf.mxu0 }
 0x1cc   : > { %1627 = vst.msk [vmem:[%s2919_s24 + $0x68] sm:$0xff] %vm1613_vm7, %v1594_v23  ;;  %v1599_v59 = vadd.f32 %v1940_v60, %v1342_v35  ;;  %v1903_v22 = vpop.f32.mrf.mxu1 }
 0x1cd   : > { %v1345_v62 = vadd.f32 %v1903_v22, %v2878_v40  ;;  %v1518_v48 = vpop.f32.mrf.mxu0 }
 0x1ce   : > { %1632 = vst.msk [vmem:[%s2919_s24 + $0x90] sm:$0xff] %vm1613_vm7, %v1599_v59  ;;  %v1597_v1 = vadd.f32 %v1518_v48, %v1334_v33  ;;  %v1336_v49 = vpop.f32.mrf.mxu1 }
 0x1cf   : > { %v1337_v41 = vadd.f32 %v1336_v49, %v2880_v26  ;;  %v1941_v42 = vpop.f32.mrf.mxu0 }
 0x1d0   : > { %1630 = vst.msk [vmem:[%s2919_s24 + $0x80] sm:$0xff] %vm1613_vm7, %v1597_v1  ;;  %v1600_v3 = vadd.f32 %v1941_v42, %v1345_v62  ;;  %v1906_v50 = vpop.f32.mrf.mxu1 }
 0x1d1   : > { %v1358_v2 = vadd.f32 %v1906_v50, %v2882_v8  ;;  %v1521_v55 = vpop.f32.mrf.mxu0 }
 0x1d2   : > { %1633 = vst.msk [vmem:[%s2919_s24 + $0x98] sm:$0xff] %vm1613_vm7, %v1600_v3  ;;  %v1598_v40 = vadd.f32 %v1521_v55, %v1337_v41  ;;  %v1349_v53 = vpop.f32.mrf.mxu1 }
 0x1d3   : > { %v1350_v6 = vadd.f32 %v1349_v53, %v2884_v29  ;;  %v1944_v39 = vpop.f32.mrf.mxu0 }
 0x1d4   : > { %1631 = vst.msk [vmem:[%s2919_s24 + $0x88] sm:$0xff] %vm1613_vm7, %v1598_v40  ;;  %v1603_v26 = vadd.f32 %v1944_v39, %v1358_v2  ;;  %v1907_v17 = vpop.f32.mrf.mxu1 }
 0x1d5   : > { %v1361_v24 = vadd.f32 %v1907_v17, %v2886_v51  ;;  %v1534_v14 = vpop.f32.mrf.mxu0 }
 0x1d6   : > { %1636 = vst.msk [vmem:[%s2919_s24 + $0xb0] sm:$0xff] %vm1613_vm7, %v1603_v26  ;;  %v1601_v8 = vadd.f32 %v1534_v14, %v1350_v6  ;;  %v1352_v46 = vpop.f32.mrf.mxu1 }
 0x1d7   : > { %v1353_v10 = vadd.f32 %v1352_v46, %v2888_v0  ;;  %v1945_v13 = vpop.f32.mrf.mxu0 }
 0x1d8   : > { %1634 = vst.msk [vmem:[%s2919_s24 + $0xa0] sm:$0xff] %vm1613_vm7, %v1601_v8  ;;  %v1604_v29 = vadd.f32 %v1945_v13, %v1361_v24  ;;  %v1910_v5 = vpop.f32.mrf.mxu1 }
 0x1d9   : > { %v1374_v25 = vadd.f32 %v1910_v5, %v2890_v54  ;;  %v1537_v34 = vpop.f32.mrf.mxu0 }
 0x1da   : > { %1637 = vst.msk [vmem:[%s2919_s24 + $0xb8] sm:$0xff] %vm1613_vm7, %v1604_v29  ;;  %v1602_v51 = vadd.f32 %v1537_v34, %v1353_v10  ;;  %v1365_v15 = vpop.f32.mrf.mxu1 }
 0x1db   : > { %v1366_v19 = vadd.f32 %v1365_v15, %v2892_v20  ;;  %v1948_v31 = vpop.f32.mrf.mxu0 }
 0x1dc   : > { %1635 = vst.msk [vmem:[%s2919_s24 + $0xa8] sm:$0xff] %vm1613_vm7, %v1602_v51  ;;  %v1607_v0 = vadd.f32 %v1948_v31, %v1374_v25  ;;  %v1911_v4 = vpop.f32.mrf.mxu1 }
 0x1dd   : > { %v1377_v32 = vadd.f32 %v1911_v4, %v2894_v43  ;;  %v1550_v37 = vpop.f32.mrf.mxu0 }
 0x1de   : > { %1640 = vst.msk [vmem:[%s2919_s24 + $0xd0] sm:$0xff] %vm1613_vm7, %v1607_v0  ;;  %v1605_v54 = vadd.f32 %v1550_v37, %v1366_v19  ;;  %v1368_v12 = vpop.f32.mrf.mxu1 }
 0x1df   : > { %v1369_v61 = vadd.f32 %v1368_v12, %v2896_v18  ;;  %v1949_v47 = vpop.f32.mrf.mxu0 }
 0x1e0   : > { %1638 = vst.msk [vmem:[%s2919_s24 + $0xc0] sm:$0xff] %vm1613_vm7, %v1605_v54  ;;  %v1608_v20 = vadd.f32 %v1949_v47, %v1377_v32  ;;  %v1914_v56 = vpop.f32.mrf.mxu1 }
 0x1e1   : > { %v1390_v58 = vadd.f32 %v1914_v56, %v2898_v7  ;;  %v1553_v52 = vpop.f32.mrf.mxu0 }
 0x1e2   : > { %1641 = vst.msk [vmem:[%s2919_s24 + $0xd8] sm:$0xff] %vm1613_vm7, %v1608_v20  ;;  %v1606_v43 = vadd.f32 %v1553_v52, %v1369_v61  ;;  %v1381_v36 = vpop.f32.mrf.mxu1 }
 0x1e3   : > { %v1382_v21 = vadd.f32 %v1381_v36, %v2900_v57  ;;  %v1952_v27 = vpop.f32.mrf.mxu0 }
 0x1e4   : > { %1639 = vst.msk [vmem:[%s2919_s24 + $0xc8] sm:$0xff] %vm1613_vm7, %v1606_v43  ;;  %v1611_v18 = vadd.f32 %v1952_v27, %v1390_v58  ;;  %v1915_v63 = vpop.f32.mrf.mxu1 }
 0x1e5   : > { %v1393_v38 = vadd.f32 %v1915_v63, %v2902_v11  ;;  %v1566_v30 = vpop.f32.mrf.mxu0 }
 0x1e6   : > { %1644 = vst.msk [vmem:[%s2919_s24 + $0xf0] sm:$0xff] %vm1613_vm7, %v1611_v18  ;;  %v1609_v7 = vadd.f32 %v1566_v30, %v1382_v21  ;;  %v1384_v28 = vpop.f32.mrf.mxu1 }
 0x1e7   : > { %v1385_v45 = vadd.f32 %v1384_v28, %v2908_v44  ;;  %v1953_v35 = vpop.f32.mrf.mxu0 }
 0x1e8   : > { %1642 = vst.msk [vmem:[%s2919_s24 + $0xe0] sm:$0xff] %vm1613_vm7, %v1609_v7  ;;  %v1612_v9 = vadd.f32 %v1953_v35, %v1393_v38 }
 0x1e9   : > { %v1569_v57 = vpop.f32.mrf.mxu0 }
 0x1ea   : > { %1645 = vst.msk [vmem:[%s2919_s24 + $0xf8] sm:$0xff] %vm1613_vm7, %v1612_v9  ;;  %v1610_v23 = vadd.f32 %v1569_v57, %v1385_v45 }
 0x1ec   : > { %1643 = vst.msk [vmem:[%s2919_s24 + $0xe8] sm:$0xff] %vm1613_vm7, %v1610_v23 }
 0x1ed PF: > { %s14_s15 = sadd.s32 1, %s2160_s15  }
 0x1ee   : > { %p11_p4 = scmp.ge.s32.totalorder %s14_s15, 4  }
 0x1f0   :  { %13 = sbr.rel (!%p11_p4) target bundleno = 1 (0x1), region = 68 }

</bundles_post_ra>
